<compile_context>
chip_gen: v7x
topology: tpu7x:2x2x1
jax: 0.10.0
libtpu: 0.0.40
codegen_flags: <defaults>
</compile_context>

<pallas_src>
import functools
import math

import jax
import jax.numpy as jnp
from jax import lax
from jax.experimental import pallas as pl
from jax.experimental.pallas import tpu as pltpu


# --------------------------------------------------------------------------------------
# In-kernel helpers
# --------------------------------------------------------------------------------------
def _layer_norm(x, gamma, beta, eps):
    # Matches the PyTorch module: unbiased std (N-1) and (std + eps) denominator.
    # Two-pass (mean, then centered sum-of-squares) for numerical stability.
    h = x.shape[-1]
    mean = jnp.sum(x, axis=-1, keepdims=True) * (1.0 / h)
    d = x - mean
    var = jnp.sum(d * d, axis=-1, keepdims=True) * (1.0 / (h - 1))
    inv = 1.0 / (jnp.sqrt(var) + eps)
    return gamma * (d * inv) + beta


def _mha(q_in, k, v, w_q, w_o, bias, n_heads, inv_scale, *,
         num_valid_keys=None, attn_out=None):
    """Multi-head attention of one query tile against cached (already projected) K/V.

    q_in : (Tq, H) f32   query rows
    k, v : (S, H)  bf16  projected + biased keys / values (from the per-batch cache)
    w_q  : (H, H)  bf16  w_o : (H, H) bf16
    bias : (1, 4H) f32   ([b_q | b_k | b_v | b_o]; only b_q / b_o used here)
    Returns (Tq, H) f32.  If attn_out is given, writes softmax probs (bf16) to it.
    """
    Tq, H = q_in.shape
    S = k.shape[0]
    hd = H // n_heads

    Q = jnp.dot(q_in.astype(jnp.bfloat16), w_q,
                preferred_element_type=jnp.float32) + bias[:, 0:H]
    Q = (Q * inv_scale).astype(jnp.bfloat16)          # fold 1/sqrt(head_dim) into Q once

    # Head-batched layout: one relayout per attention call instead of n_heads lane slices.
    Qh = Q.reshape(Tq, n_heads, hd).transpose(1, 0, 2)     # (nh, Tq, hd)
    Kh = k.reshape(S, n_heads, hd).transpose(1, 0, 2)      # (nh, S,  hd)
    Vh = v.reshape(S, n_heads, hd).transpose(1, 0, 2)      # (nh, S,  hd)

    energy = lax.dot_general(Qh, Kh, (((2,), (2,)), ((0,), (0,))),
                             preferred_element_type=jnp.float32)    # (nh, Tq, S)
    if num_valid_keys is not None:                  # zero-padded key rows (T padding)
        key_idx = lax.broadcasted_iota(jnp.int32, energy.shape, 2)
        energy = jnp.where(key_idx < num_valid_keys, energy, -1e10)
    # TODO(synk): trg_mask / cross_attn_mask are None in this setup; a user-provided mask
    # would be applied here (jnp.where(mask == 0, -1e10, energy)) before the row max.
    energy = energy - jnp.max(energy, axis=-1, keepdims=True)
    p = jnp.exp(energy)
    attn = p * pl.reciprocal(jnp.sum(p, axis=-1, keepdims=True), approx=True)
    if attn_out is not None:
        attn_out[...] = attn.astype(attn_out.dtype)        # bf16 attention-probs output

    ctx = lax.dot_general(attn.astype(jnp.bfloat16), Vh,
                          (((2,), (1,)), ((0,), (0,))),
                          preferred_element_type=jnp.float32)       # (nh, Tq, hd)
    # Single fused output projection: (Tq,H) @ (H,H) instead of n_heads (Tq,hd)@(hd,H).
    ctx = ctx.astype(jnp.bfloat16).transpose(1, 0, 2).reshape(Tq, H)
    out = jnp.dot(ctx, w_o, preferred_element_type=jnp.float32)
    return out + bias[:, 3 * H:4 * H]


# --------------------------------------------------------------------------------------
# Kernel
# --------------------------------------------------------------------------------------
def decoder_layer_kernel(trg_ref, src_ref,
                         sa_wq_ref, sa_wkv_ref, sa_wo_ref, sa_b_ref,
                         ea_wq_ref, ea_wkv_ref, ea_wo_ref, ea_b_ref,
                         pf_w1_ref, pf_b1_ref, pf_w2_ref, pf_b2_ref,
                         ln_g_ref, ln_b_ref,
                         out_ref, attn_ref,
                         sa_k_ref, sa_v_ref, ea_k_ref, ea_v_ref,
                         *, n_heads, inv_scale, eps, tq, t_true):
    H = out_ref.shape[-1]
    t_pad = trg_ref.shape[0]
    q = pl.program_id(1)

    # ---- K/V projections: computed once per batch element (q == 0) and cached in bf16
    #      VMEM scratch, reused by every query tile (removes the nq-fold redundant
    #      projection matmuls flagged in the review). ----
    @pl.when(q == 0)
    def _():
        sa_kv = jnp.dot(trg_ref[...], sa_wkv_ref[...],
                        preferred_element_type=jnp.float32) + sa_b_ref[:, H:3 * H]
        sa_k_ref[...] = sa_kv[:, 0:H].astype(jnp.bfloat16)
        sa_v_ref[...] = sa_kv[:, H:2 * H].astype(jnp.bfloat16)
        ea_kv = jnp.dot(src_ref[...], ea_wkv_ref[...],
                        preferred_element_type=jnp.float32) + ea_b_ref[:, H:3 * H]
        ea_k_ref[...] = ea_kv[:, 0:H].astype(jnp.bfloat16)
        ea_v_ref[...] = ea_kv[:, H:2 * H].astype(jnp.bfloat16)

    # Query rows for this tile, sliced from the already-resident full-T block (no
    # separate query DMA stream); upcast to f32 for residual / LayerNorm math.
    row0 = pl.multiple_of(q * tq, tq)
    trg_q = trg_ref[pl.ds(row0, tq), :].astype(jnp.float32)

    n_valid = t_true if t_true < t_pad else None    # mask only when T was zero-padded

    # --- self attention + residual + LN1 (dropout = identity) ---
    sa_out = _mha(trg_q, sa_k_ref[...], sa_v_ref[...],
                  sa_wq_ref[...], sa_wo_ref[...], sa_b_ref[...],
                  n_heads, inv_scale, num_valid_keys=n_valid)
    t1 = _layer_norm(trg_q + sa_out, ln_g_ref[0:1, :], ln_b_ref[0:1, :], eps)

    # --- cross attention (returns attention probs) + residual + LN2 ---
    ea_out = _mha(t1, ea_k_ref[...], ea_v_ref[...],
                  ea_wq_ref[...], ea_wo_ref[...], ea_b_ref[...],
                  n_heads, inv_scale, attn_out=attn_ref)
    t2 = _layer_norm(t1 + ea_out, ln_g_ref[1:2, :], ln_b_ref[1:2, :], eps)

    # --- positionwise feed-forward (Conv1d k=1 == dense) + residual + LN3 ---
    h1 = jnp.maximum(
        jnp.dot(t2.astype(jnp.bfloat16), pf_w1_ref[...],
                preferred_element_type=jnp.float32) + pf_b1_ref[...], 0.0)
    ff = jnp.dot(h1.astype(jnp.bfloat16), pf_w2_ref[...],
                 preferred_element_type=jnp.float32) + pf_b2_ref[...]
    t3 = _layer_norm(t2 + ff, ln_g_ref[2:3, :], ln_b_ref[2:3, :], eps)

    out_ref[...] = t3


# --------------------------------------------------------------------------------------
# Wrapper
# --------------------------------------------------------------------------------------
def decoder_layer(trg, src, params, *, n_heads, eps=1e-12, q_block=128):
    """trg: (B, T, H) f32/bf16, src: (B, S, H).  Returns (out f32, attention bf16).

    q_block: query-tile rows.  128 is a safe default; on v5e/v6e (128 MiB VMEM) 256-512
    amortizes per-step overhead better, on v7x (64 MiB VMEM) 64-128 keeps blocks resident.
    """
    B, T, H = trg.shape
    S = src.shape[1]
    PF = params["pf_w1"].shape[1]
    inv_scale = 1.0 / math.sqrt(H // n_heads)

    # Query tiling: small sequences run as one tile; longer ones are zero-padded up to a
    # multiple of q_block (padded key rows masked in-kernel, padded query rows sliced off).
    if T <= q_block:
        tq, t_pad = T, T
    else:
        tq = q_block
        t_pad = q_block * pl.cdiv(T, q_block)
    nq = t_pad // tq

    # Activations are DMA'd in bf16 (all matmuls run bf16 on the MXU anyway; f32 inputs
    # only doubled DMA bytes + VMEM).  LN/residual math is done in f32 inside the kernel.
    trg_in = trg.astype(jnp.bfloat16)
    src_in = src.astype(jnp.bfloat16)
    if t_pad != T:
        trg_in = jnp.pad(trg_in, ((0, 0), (0, t_pad - T), (0, 0)))

    kernel = functools.partial(decoder_layer_kernel, n_heads=n_heads,
                               inv_scale=inv_scale, eps=eps, tq=tq, t_true=T)

    # Weights / biases / LN params: constant index map (fetched once) and single-buffered
    # (Buffered(1)) so resident weight VMEM is not doubled by the pipeline.
    def const_spec(shape):
        n = len(shape)

        def imap(b, q):
            return (0,) * n

        try:
            return pl.BlockSpec(shape, imap, pipeline_mode=pl.Buffered(1))
        except Exception:  # older JAX without pipeline_mode / Buffered support
            return pl.BlockSpec(shape, imap)

    # VMEM cap: leave headroom under the physical capacity of whatever chip we are on
    # (v7x: 64 MiB -> ~56 MiB usable; v5e/v6e: 128 MiB -> 112 MiB).
    try:
        vmem_cap = int(pltpu.get_tpu_info().vmem_capacity_bytes)
    except Exception:
        vmem_cap = 64 * 1024 * 1024
    vmem_limit = max(32 * 1024 * 1024,
                     min(vmem_cap - 8 * 1024 * 1024, 112 * 1024 * 1024))

    out, attn = pl.pallas_call(
        kernel,
        out_shape=(
            jax.ShapeDtypeStruct((B, t_pad, H), jnp.float32),
            jax.ShapeDtypeStruct((B, n_heads, t_pad, S), jnp.bfloat16),
        ),
        grid=(B, nq),
        in_specs=[
            # trg: query tiles are sliced from this block; also self-attn K/V source.
            pl.BlockSpec((None, t_pad, H), lambda b, q: (b, 0, 0)),
            # src: cross-attn K/V source.
            pl.BlockSpec((None, S, H), lambda b, q: (b, 0, 0)),
            const_spec((H, H)),          # sa  W_q
            const_spec((H, 2 * H)),      # sa  W_kv (fused [W_k | W_v])
            const_spec((H, H)),          # sa  W_o
            const_spec((1, 4 * H)),      # sa  biases [q|k|v|o]
            const_spec((H, H)),          # ea  W_q
            const_spec((H, 2 * H)),      # ea  W_kv
            const_spec((H, H)),          # ea  W_o
            const_spec((1, 4 * H)),      # ea  biases
            const_spec((H, PF)),         # pf fc_1 weight (in, out)
            const_spec((1, PF)),         # pf fc_1 bias
            const_spec((PF, H)),         # pf fc_2 weight (in, out)
            const_spec((1, H)),          # pf fc_2 bias
            const_spec((3, H)),          # LN gammas
            const_spec((3, H)),          # LN betas
        ],
        out_specs=[
            pl.BlockSpec((None, tq, H), lambda b, q: (b, q, 0)),
            # TODO(synk): for peak store bandwidth S should be a multiple of 128
            # (lane-dense attn writes); small / odd S falls back to masked stores.
            pl.BlockSpec((None, n_heads, tq, S), lambda b, q: (b, 0, q, 0)),
        ],
        scratch_shapes=[
            pltpu.VMEM((t_pad, H), jnp.bfloat16),   # self-attn K cache
            pltpu.VMEM((t_pad, H), jnp.bfloat16),   # self-attn V cache
            pltpu.VMEM((S, H), jnp.bfloat16),       # cross-attn K cache
            pltpu.VMEM((S, H), jnp.bfloat16),       # cross-attn V cache
        ],
        compiler_params=pltpu.CompilerParams(
            # Batch axis sharded across cores; query axis must be sequential so the
            # per-batch K/V caches written at q == 0 remain valid across its tiles.
            dimension_semantics=("parallel", "arbitrary"),
            vmem_limit_bytes=vmem_limit),
    )(trg_in, src_in,
      params["sa_wq"], params["sa_wkv"], params["sa_wo"], params["sa_b"],
      params["ea_wq"], params["ea_wkv"], params["ea_wo"], params["ea_b"],
      params["pf_w1"], params["pf_b1"], params["pf_w2"], params["pf_b2"],
      params["ln_gamma"], params["ln_beta"])

    if t_pad != T:
        out = out[:, :T]
        attn = attn[:, :, :T]
    return out, attn


# --------------------------------------------------------------------------------------
# Pure-JAX f32 reference (mirrors the PyTorch forward) for correctness checking
# --------------------------------------------------------------------------------------
def _ref_ln(x, g, b, eps=1e-12):
    h = x.shape[-1]
    mean = x.mean(-1, keepdims=True)
    std = jnp.sqrt(((x - mean) ** 2).sum(-1, keepdims=True) / (h - 1))
    return g * (x - mean) / (std + eps) + b


def _ref_attention(q, kv, wq, wkv, wo, b, n_heads):
    Bsz, T, H = q.shape
    S = kv.shape[1]
    hd = H // n_heads
    wq = wq.astype(jnp.float32)
    wkv = wkv.astype(jnp.float32)
    wo = wo.astype(jnp.float32)
    Q = q @ wq + b[0, 0:H]
    K = kv @ wkv[:, 0:H] + b[0, H:2 * H]
    V = kv @ wkv[:, H:2 * H] + b[0, 2 * H:3 * H]
    Qh = Q.reshape(Bsz, T, n_heads, hd).transpose(0, 2, 1, 3)
    Kh = K.reshape(Bsz, S, n_heads, hd).transpose(0, 2, 1, 3)
    Vh = V.reshape(Bsz, S, n_heads, hd).transpose(0, 2, 1, 3)
    e = jnp.einsum("bhqd,bhkd->bhqk", Qh, Kh) / math.sqrt(hd)
    a = jax.nn.softmax(e, axis=-1)
    x = jnp.einsum("bhqk,bhkd->bhqd", a, Vh).transpose(0, 2, 1, 3).reshape(Bsz, T, H)
    return x @ wo + b[0, 3 * H:4 * H], a


def ref_decoder_layer(trg, src, p, n_heads):
    sa, _ = _ref_attention(trg, trg, p["sa_wq"], p["sa_wkv"], p["sa_wo"], p["sa_b"],
                           n_heads)
    t1 = _ref_ln(trg + sa, p["ln_gamma"][0], p["ln_beta"][0])
    ea, attn = _ref_attention(t1, src, p["ea_wq"], p["ea_wkv"], p["ea_wo"], p["ea_b"],
                              n_heads)
    t2 = _ref_ln(t1 + ea, p["ln_gamma"][1], p["ln_beta"][1])
    h1 = jnp.maximum(t2 @ p["pf_w1"].astype(jnp.float32) + p["pf_b1"][0], 0.0)
    ff = h1 @ p["pf_w2"].astype(jnp.float32) + p["pf_b2"][0]
    t3 = _ref_ln(t2 + ff, p["ln_gamma"][2], p["ln_beta"][2])
    return t3, attn


# --------------------------------------------------------------------------------------
# Main
# --------------------------------------------------------------------------------------
if __name__ == "__main__":
    HID, N_HEADS, PF = 32, 4, 64

    key = jax.random.PRNGKey(0)
    ks = jax.random.split(key, 18)

    def nrm(k, shape, scale=0.1, dtype=jnp.float32):
        return (scale * jax.random.normal(k, shape)).astype(dtype)

    bf = jnp.bfloat16
    params = {
        # attention weights stored as (in, out) so y = x @ W + b; matmul weights in bf16
        "sa_wq": nrm(ks[4], (HID, HID), dtype=bf),
        "sa_wkv": nrm(ks[5], (HID, 2 * HID), dtype=bf),
        "sa_wo": nrm(ks[6], (HID, HID), dtype=bf),
        "sa_b": nrm(ks[7], (1, 4 * HID)),
        "ea_wq": nrm(ks[8], (HID, HID), dtype=bf),
        "ea_wkv": nrm(ks[9], (HID, 2 * HID), dtype=bf),
        "ea_wo": nrm(ks[10], (HID, HID), dtype=bf),
        "ea_b": nrm(ks[11], (1, 4 * HID)),
        # Conv1d(k=1) weights pre-transposed to (in, out)
        "pf_w1": nrm(ks[12], (HID, PF), dtype=bf),
        "pf_b1": nrm(ks[13], (1, PF)),
        "pf_w2": nrm(ks[14], (PF, HID), dtype=bf),
        "pf_b2": nrm(ks[15], (1, HID)),
        # LayerNorm: gamma=1, beta=0 (as in the module __init__)
        "ln_gamma": jnp.ones((3, HID), jnp.float32),
        "ln_beta": jnp.zeros((3, HID), jnp.float32),
    }

    def check(trg, src, q_block, tag):
        out, attn = decoder_layer(trg, src, params, n_heads=N_HEADS, q_block=q_block)
        out = jax.block_until_ready(out)
        attn = jax.block_until_ready(attn)
        ref_out, ref_attn = ref_decoder_layer(trg, src, params, N_HEADS)
        B, T, _ = trg.shape
        S = src.shape[1]
        assert out.shape == (B, T, HID), (tag, out.shape)
        assert attn.shape == (B, N_HEADS, T, S), (tag, attn.shape)
        attn_f32 = attn.astype(jnp.float32)
        # Tolerances account for bf16 activations/weights (f32 MXU accumulation) and the
        # bf16 attention-probs output vs the f32 reference.
        assert jnp.allclose(out, ref_out, atol=5e-2, rtol=5e-2), \
            (tag, float(jnp.max(jnp.abs(out - ref_out))))
        assert jnp.allclose(attn_f32, ref_attn, atol=2e-2, rtol=2e-2), \
            (tag, float(jnp.max(jnp.abs(attn_f32 - ref_attn))))

    # Case 1: tiny shapes, single query tile per batch element.
    trg1 = nrm(ks[0], (2, 8, HID), 1.0)
    src1 = nrm(ks[1], (2, 8, HID), 1.0)
    check(trg1, src1, 128, "single-tile")

    # Case 2: multi-tile query axis with T not divisible by the tile size — exercises the
    # per-batch K/V caching, host-side padding and in-kernel key-masking paths.
    trg2 = nrm(ks[2], (2, 40, HID), 1.0)
    src2 = nrm(ks[3], (2, 24, HID), 1.0)
    check(trg2, src2, 16, "multi-tile")

    print("KERNEL_OK")
</pallas_src>

<mosaic_0001>
module attributes {stable_mosaic.version = 11 : i64} {
  func.func @decoder_layer_kernel(%arg0: i32, %arg1: i32, %arg2: memref<1x8x32xbf16, #tpu.memory_space<vmem>>, %arg3: memref<1x8x32xbf16, #tpu.memory_space<vmem>>, %arg4: memref<32x32xbf16, #tpu.memory_space<vmem>>, %arg5: memref<32x64xbf16, #tpu.memory_space<vmem>>, %arg6: memref<32x32xbf16, #tpu.memory_space<vmem>>, %arg7: memref<1x128xf32, #tpu.memory_space<vmem>>, %arg8: memref<32x32xbf16, #tpu.memory_space<vmem>>, %arg9: memref<32x64xbf16, #tpu.memory_space<vmem>>, %arg10: memref<32x32xbf16, #tpu.memory_space<vmem>>, %arg11: memref<1x128xf32, #tpu.memory_space<vmem>>, %arg12: memref<32x64xbf16, #tpu.memory_space<vmem>>, %arg13: memref<1x64xf32, #tpu.memory_space<vmem>>, %arg14: memref<64x32xbf16, #tpu.memory_space<vmem>>, %arg15: memref<1x32xf32, #tpu.memory_space<vmem>>, %arg16: memref<3x32xf32, #tpu.memory_space<vmem>>, %arg17: memref<3x32xf32, #tpu.memory_space<vmem>>, %arg18: memref<1x8x32xf32, #tpu.memory_space<vmem>>, %arg19: memref<1x4x8x8xbf16, #tpu.memory_space<vmem>>, %arg20: memref<8x32xbf16, #tpu.memory_space<vmem>>, %arg21: memref<8x32xbf16, #tpu.memory_space<vmem>>, %arg22: memref<8x32xbf16, #tpu.memory_space<vmem>>, %arg23: memref<8x32xbf16, #tpu.memory_space<vmem>>) attributes {dimension_semantics = [#tpu.dimension_semantics<parallel>, #tpu.dimension_semantics<arbitrary>], iteration_bounds = array<i64: 2, 1>, scalar_prefetch = 0 : i64, scratch_operands = 4 : i64, tpu.core_type = #tpu.core_type<tc>, window_params = [{transform_indices = @transform_0, window_bounds = array<i64: 1, 8, 32>}, {transform_indices = @transform_1, window_bounds = array<i64: 1, 8, 32>}, {pipeline_mode = #tpu.pipeline_mode<synchronous>, transform_indices = @transform_2, window_bounds = array<i64: 32, 32>}, {pipeline_mode = #tpu.pipeline_mode<synchronous>, transform_indices = @transform_3, window_bounds = array<i64: 32, 64>}, {pipeline_mode = #tpu.pipeline_mode<synchronous>, transform_indices = @transform_4, window_bounds = array<i64: 32, 32>}, {pipeline_mode = #tpu.pipeline_mode<synchronous>, transform_indices = @transform_5, window_bounds = array<i64: 1, 128>}, {pipeline_mode = #tpu.pipeline_mode<synchronous>, transform_indices = @transform_6, window_bounds = array<i64: 32, 32>}, {pipeline_mode = #tpu.pipeline_mode<synchronous>, transform_indices = @transform_7, window_bounds = array<i64: 32, 64>}, {pipeline_mode = #tpu.pipeline_mode<synchronous>, transform_indices = @transform_8, window_bounds = array<i64: 32, 32>}, {pipeline_mode = #tpu.pipeline_mode<synchronous>, transform_indices = @transform_9, window_bounds = array<i64: 1, 128>}, {pipeline_mode = #tpu.pipeline_mode<synchronous>, transform_indices = @transform_10, window_bounds = array<i64: 32, 64>}, {pipeline_mode = #tpu.pipeline_mode<synchronous>, transform_indices = @transform_11, window_bounds = array<i64: 1, 64>}, {pipeline_mode = #tpu.pipeline_mode<synchronous>, transform_indices = @transform_12, window_bounds = array<i64: 64, 32>}, {pipeline_mode = #tpu.pipeline_mode<synchronous>, transform_indices = @transform_13, window_bounds = array<i64: 1, 32>}, {pipeline_mode = #tpu.pipeline_mode<synchronous>, transform_indices = @transform_14, window_bounds = array<i64: 3, 32>}, {pipeline_mode = #tpu.pipeline_mode<synchronous>, transform_indices = @transform_15, window_bounds = array<i64: 3, 32>}, {transform_indices = @transform_16, window_bounds = array<i64: 1, 8, 32>}, {transform_indices = @transform_17, window_bounds = array<i64: 1, 4, 8, 8>}]} {
    %c0_i32 = arith.constant 0 : i32
    %0 = arith.cmpi eq, %arg1, %c0_i32 : i32
    %1 = arith.extui %0 : i1 to i32
    %c0_i32_0 = arith.constant 0 : i32
    %2 = arith.cmpi ne, %1, %c0_i32_0 : i32
    scf.if %2 {
      %c0_81 = arith.constant 0 : index
      %c0_82 = arith.constant 0 : index
      %c0_83 = arith.constant 0 : index
      %183 = vector.load %arg2[%c0_81, %c0_82, %c0_83] : memref<1x8x32xbf16, #tpu.memory_space<vmem>>, vector<1x8x32xbf16>
      %184 = vector.shape_cast %183 : vector<1x8x32xbf16> to vector<8x32xbf16>
      %c0_84 = arith.constant 0 : index
      %c0_85 = arith.constant 0 : index
      %185 = vector.load %arg5[%c0_84, %c0_85] : memref<32x64xbf16, #tpu.memory_space<vmem>>, vector<32x64xbf16>
      %cst_86 = arith.constant dense<0.000000e+00> : vector<8x64xf32>
      %186 = tpu.matmul %184, %185, %cst_86 {dimension_numbers = #tpu.dot_dimension_numbers<[1], [0], [0], [1], [0, 0, 1, 1], [], []>} : vector<8x32xbf16>, vector<32x64xbf16>, vector<8x64xf32> -> vector<8x64xf32>
      %c0_87 = arith.constant 0 : index
      %c32 = arith.constant 32 : index
      %187 = vector.load %arg7[%c0_87, %c32] : memref<1x128xf32, #tpu.memory_space<vmem>>, vector<1x64xf32>
      %188 = vector.broadcast %187 : vector<1x64xf32> to vector<8x64xf32>
      %189 = arith.addf %186, %188 : vector<8x64xf32>
      %190 = vector.extract_strided_slice %189 {offsets = [0, 0], sizes = [8, 32], strides = [1, 1]} : vector<8x64xf32> to vector<8x32xf32>
      %191 = arith.truncf %190 : vector<8x32xf32> to vector<8x32xbf16>
      %c0_88 = arith.constant 0 : index
      %c0_89 = arith.constant 0 : index
      %192 = vector.load %arg20[%c0_88, %c0_89] : memref<8x32xbf16, #tpu.memory_space<vmem>>, vector<8x32xbf16>
      tpu.vector_store %arg20[%c0_88, %c0_89], %191 {strides = array<i32>} : memref<8x32xbf16, #tpu.memory_space<vmem>>, vector<8x32xbf16>,
      %193 = vector.extract_strided_slice %189 {offsets = [0, 32], sizes = [8, 32], strides = [1, 1]} : vector<8x64xf32> to vector<8x32xf32>
      %194 = arith.truncf %193 : vector<8x32xf32> to vector<8x32xbf16>
      %c0_90 = arith.constant 0 : index
      %c0_91 = arith.constant 0 : index
      %195 = vector.load %arg21[%c0_90, %c0_91] : memref<8x32xbf16, #tpu.memory_space<vmem>>, vector<8x32xbf16>
      tpu.vector_store %arg21[%c0_90, %c0_91], %194 {strides = array<i32>} : memref<8x32xbf16, #tpu.memory_space<vmem>>, vector<8x32xbf16>,
      %c0_92 = arith.constant 0 : index
      %c0_93 = arith.constant 0 : index
      %c0_94 = arith.constant 0 : index
      %196 = vector.load %arg3[%c0_92, %c0_93, %c0_94] : memref<1x8x32xbf16, #tpu.memory_space<vmem>>, vector<1x8x32xbf16>
      %197 = vector.shape_cast %196 : vector<1x8x32xbf16> to vector<8x32xbf16>
      %c0_95 = arith.constant 0 : index
      %c0_96 = arith.constant 0 : index
      %198 = vector.load %arg9[%c0_95, %c0_96] : memref<32x64xbf16, #tpu.memory_space<vmem>>, vector<32x64xbf16>
      %cst_97 = arith.constant dense<0.000000e+00> : vector<8x64xf32>
      %199 = tpu.matmul %197, %198, %cst_97 {dimension_numbers = #tpu.dot_dimension_numbers<[1], [0], [0], [1], [0, 0, 1, 1], [], []>} : vector<8x32xbf16>, vector<32x64xbf16>, vector<8x64xf32> -> vector<8x64xf32>
      %c0_98 = arith.constant 0 : index
      %c32_99 = arith.constant 32 : index
      %200 = vector.load %arg11[%c0_98, %c32_99] : memref<1x128xf32, #tpu.memory_space<vmem>>, vector<1x64xf32>
      %201 = vector.broadcast %200 : vector<1x64xf32> to vector<8x64xf32>
      %202 = arith.addf %199, %201 : vector<8x64xf32>
      %203 = vector.extract_strided_slice %202 {offsets = [0, 0], sizes = [8, 32], strides = [1, 1]} : vector<8x64xf32> to vector<8x32xf32>
      %204 = arith.truncf %203 : vector<8x32xf32> to vector<8x32xbf16>
      %c0_100 = arith.constant 0 : index
      %c0_101 = arith.constant 0 : index
      %205 = vector.load %arg22[%c0_100, %c0_101] : memref<8x32xbf16, #tpu.memory_space<vmem>>, vector<8x32xbf16>
      tpu.vector_store %arg22[%c0_100, %c0_101], %204 {strides = array<i32>} : memref<8x32xbf16, #tpu.memory_space<vmem>>, vector<8x32xbf16>,
      %206 = vector.extract_strided_slice %202 {offsets = [0, 32], sizes = [8, 32], strides = [1, 1]} : vector<8x64xf32> to vector<8x32xf32>
      %207 = arith.truncf %206 : vector<8x32xf32> to vector<8x32xbf16>
      %c0_102 = arith.constant 0 : index
      %c0_103 = arith.constant 0 : index
      %208 = vector.load %arg23[%c0_102, %c0_103] : memref<8x32xbf16, #tpu.memory_space<vmem>>, vector<8x32xbf16>
      tpu.vector_store %arg23[%c0_102, %c0_103], %207 {strides = array<i32>} : memref<8x32xbf16, #tpu.memory_space<vmem>>, vector<8x32xbf16>,
    } else {
    }
    %c8_i32 = arith.constant 8 : i32
    %3 = arith.muli %arg1, %c8_i32 : i32
    %4 = tpu.assume_multiple %3, 8 : i32
    %c0 = arith.constant 0 : index
    %5 = arith.index_cast %4 : i32 to index
    %c0_1 = arith.constant 0 : index
    %6 = vector.load %arg2[%c0, %5, %c0_1] : memref<1x8x32xbf16, #tpu.memory_space<vmem>>, vector<1x8x32xbf16>
    %7 = vector.shape_cast %6 : vector<1x8x32xbf16> to vector<8x32xbf16>
    %8 = arith.extf %7 : vector<8x32xbf16> to vector<8x32xf32>
    %c0_2 = arith.constant 0 : index
    %c0_3 = arith.constant 0 : index
    %9 = vector.load %arg20[%c0_2, %c0_3] : memref<8x32xbf16, #tpu.memory_space<vmem>>, vector<8x32xbf16>
    %c0_4 = arith.constant 0 : index
    %c0_5 = arith.constant 0 : index
    %10 = vector.load %arg21[%c0_4, %c0_5] : memref<8x32xbf16, #tpu.memory_space<vmem>>, vector<8x32xbf16>
    %c0_6 = arith.constant 0 : index
    %c0_7 = arith.constant 0 : index
    %11 = vector.load %arg4[%c0_6, %c0_7] : memref<32x32xbf16, #tpu.memory_space<vmem>>, vector<32x32xbf16>
    %c0_8 = arith.constant 0 : index
    %c0_9 = arith.constant 0 : index
    %12 = vector.load %arg6[%c0_8, %c0_9] : memref<32x32xbf16, #tpu.memory_space<vmem>>, vector<32x32xbf16>
    %c0_10 = arith.constant 0 : index
    %c0_11 = arith.constant 0 : index
    %13 = vector.load %arg7[%c0_10, %c0_11] : memref<1x128xf32, #tpu.memory_space<vmem>>, vector<1x128xf32>
    %14 = arith.truncf %8 : vector<8x32xf32> to vector<8x32xbf16>
    %cst = arith.constant dense<0.000000e+00> : vector<8x32xf32>
    %15 = tpu.matmul %14, %11, %cst {dimension_numbers = #tpu.dot_dimension_numbers<[1], [0], [0], [1], [0, 0, 1, 1], [], []>} : vector<8x32xbf16>, vector<32x32xbf16>, vector<8x32xf32> -> vector<8x32xf32>
    %16 = vector.extract_strided_slice %13 {offsets = [0, 0], sizes = [1, 32], strides = [1, 1]} : vector<1x128xf32> to vector<1x32xf32>
    %17 = vector.broadcast %16 : vector<1x32xf32> to vector<8x32xf32>
    %18 = arith.addf %15, %17 : vector<8x32xf32>
    %cst_12 = arith.constant 0.353553385 : f32
    %19 = vector.broadcast %cst_12 : f32 to vector<8x32xf32>
    %20 = arith.mulf %18, %19 : vector<8x32xf32>
    %21 = arith.truncf %20 : vector<8x32xf32> to vector<8x32xbf16>
    %22 = vector.shape_cast %21 : vector<8x32xbf16> to vector<8x4x8xbf16>
    %23 = tpu.transpose %22, [1, 0, 2] : vector<8x4x8xbf16> -> vector<4x8x8xbf16>
    %24 = vector.shape_cast %9 : vector<8x32xbf16> to vector<8x4x8xbf16>
    %25 = tpu.transpose %24, [1, 0, 2] : vector<8x4x8xbf16> -> vector<4x8x8xbf16>
    %26 = vector.shape_cast %10 : vector<8x32xbf16> to vector<8x4x8xbf16>
    %27 = tpu.transpose %26, [1, 0, 2] : vector<8x4x8xbf16> -> vector<4x8x8xbf16>
    %cst_13 = arith.constant dense<0.000000e+00> : vector<4x8x8xf32>
    %28 = tpu.matmul %23, %25, %cst_13 {dimension_numbers = #tpu.dot_dimension_numbers<[2], [2], [1], [1], [0, 0, 0, 1, 1, 1], [0], [0]>} : vector<4x8x8xbf16>, vector<4x8x8xbf16>, vector<4x8x8xf32> -> vector<4x8x8xf32>
    %cst_14 = arith.constant dense<0xFF800000> : vector<4x8xf32>
    %29 = vector.multi_reduction <maximumf>, %28, %cst_14 [2] : vector<4x8x8xf32> to vector<4x8xf32>
    %30 = vector.shape_cast %29 : vector<4x8xf32> to vector<4x8x1xf32>
    %31 = vector.broadcast %30 : vector<4x8x1xf32> to vector<4x8x8xf32>
    %32 = arith.subf %28, %31 : vector<4x8x8xf32>
    %33 = math.exp %32 : vector<4x8x8xf32>
    %cst_15 = arith.constant dense<0.000000e+00> : vector<4x8xf32>
    %34 = vector.multi_reduction <add>, %33, %cst_15 [2] : vector<4x8x8xf32> to vector<4x8xf32>
    %35 = vector.shape_cast %34 : vector<4x8xf32> to vector<4x8x1xf32>
    %36 = tpu.reciprocal %35 {approx = true} : vector<4x8x1xf32> -> vector<4x8x1xf32>
    %37 = vector.broadcast %36 : vector<4x8x1xf32> to vector<4x8x8xf32>
    %38 = arith.mulf %33, %37 : vector<4x8x8xf32>
    %39 = arith.truncf %38 : vector<4x8x8xf32> to vector<4x8x8xbf16>
    %cst_16 = arith.constant dense<0.000000e+00> : vector<4x8x8xf32>
    %40 = tpu.matmul %39, %27, %cst_16 {dimension_numbers = #tpu.dot_dimension_numbers<[2], [1], [1], [2], [0, 0, 0, 1, 1, 2], [0], [0]>} : vector<4x8x8xbf16>, vector<4x8x8xbf16>, vector<4x8x8xf32> -> vector<4x8x8xf32>
    %41 = arith.truncf %40 : vector<4x8x8xf32> to vector<4x8x8xbf16>
    %42 = tpu.transpose %41, [1, 0, 2] : vector<4x8x8xbf16> -> vector<8x4x8xbf16>
    %43 = vector.shape_cast %42 : vector<8x4x8xbf16> to vector<8x32xbf16>
    %cst_17 = arith.constant dense<0.000000e+00> : vector<8x32xf32>
    %44 = tpu.matmul %43, %12, %cst_17 {dimension_numbers = #tpu.dot_dimension_numbers<[1], [0], [0], [1], [0, 0, 1, 1], [], []>} : vector<8x32xbf16>, vector<32x32xbf16>, vector<8x32xf32> -> vector<8x32xf32>
    %45 = vector.extract_strided_slice %13 {offsets = [0, 96], sizes = [1, 32], strides = [1, 1]} : vector<1x128xf32> to vector<1x32xf32>
    %46 = vector.broadcast %45 : vector<1x32xf32> to vector<8x32xf32>
    %47 = arith.addf %44, %46 : vector<8x32xf32>
    %48 = arith.addf %8, %47 : vector<8x32xf32>
    %c0_18 = arith.constant 0 : index
    %c0_19 = arith.constant 0 : index
    %49 = vector.load %arg16[%c0_18, %c0_19] : memref<3x32xf32, #tpu.memory_space<vmem>>, vector<1x32xf32>
    %c0_20 = arith.constant 0 : index
    %c0_21 = arith.constant 0 : index
    %50 = vector.load %arg17[%c0_20, %c0_21] : memref<3x32xf32, #tpu.memory_space<vmem>>, vector<1x32xf32>
    %cst_22 = arith.constant dense<0.000000e+00> : vector<8xf32>
    %51 = vector.multi_reduction <add>, %48, %cst_22 [1] : vector<8x32xf32> to vector<8xf32>
    %52 = vector.shape_cast %51 : vector<8xf32> to vector<8x1xf32>
    %cst_23 = arith.constant 3.125000e-02 : f32
    %53 = vector.broadcast %cst_23 : f32 to vector<8x1xf32>
    %54 = arith.mulf %52, %53 : vector<8x1xf32>
    %55 = vector.broadcast %54 : vector<8x1xf32> to vector<8x32xf32>
    %56 = arith.subf %48, %55 : vector<8x32xf32>
    %57 = arith.mulf %56, %56 : vector<8x32xf32>
    %cst_24 = arith.constant dense<0.000000e+00> : vector<8xf32>
    %58 = vector.multi_reduction <add>, %57, %cst_24 [1] : vector<8x32xf32> to vector<8xf32>
    %59 = vector.shape_cast %58 : vector<8xf32> to vector<8x1xf32>
    %cst_25 = arith.constant 0.0322580636 : f32
    %60 = vector.broadcast %cst_25 : f32 to vector<8x1xf32>
    %61 = arith.mulf %59, %60 : vector<8x1xf32>
    %62 = math.sqrt %61 : vector<8x1xf32>
    %cst_26 = arith.constant 9.99999996E-13 : f32
    %63 = vector.broadcast %cst_26 : f32 to vector<8x1xf32>
    %64 = arith.addf %62, %63 : vector<8x1xf32>
    %cst_27 = arith.constant 1.000000e+00 : f32
    %65 = vector.broadcast %cst_27 : f32 to vector<8x1xf32>
    %66 = arith.divf %65, %64 : vector<8x1xf32>
    %67 = vector.broadcast %66 : vector<8x1xf32> to vector<8x32xf32>
    %68 = arith.mulf %56, %67 : vector<8x32xf32>
    %69 = vector.broadcast %49 : vector<1x32xf32> to vector<8x32xf32>
    %70 = arith.mulf %69, %68 : vector<8x32xf32>
    %71 = vector.broadcast %50 : vector<1x32xf32> to vector<8x32xf32>
    %72 = arith.addf %70, %71 : vector<8x32xf32>
    %c0_28 = arith.constant 0 : index
    %c0_29 = arith.constant 0 : index
    %73 = vector.load %arg22[%c0_28, %c0_29] : memref<8x32xbf16, #tpu.memory_space<vmem>>, vector<8x32xbf16>
    %c0_30 = arith.constant 0 : index
    %c0_31 = arith.constant 0 : index
    %74 = vector.load %arg23[%c0_30, %c0_31] : memref<8x32xbf16, #tpu.memory_space<vmem>>, vector<8x32xbf16>
    %c0_32 = arith.constant 0 : index
    %c0_33 = arith.constant 0 : index
    %75 = vector.load %arg8[%c0_32, %c0_33] : memref<32x32xbf16, #tpu.memory_space<vmem>>, vector<32x32xbf16>
    %c0_34 = arith.constant 0 : index
    %c0_35 = arith.constant 0 : index
    %76 = vector.load %arg10[%c0_34, %c0_35] : memref<32x32xbf16, #tpu.memory_space<vmem>>, vector<32x32xbf16>
    %c0_36 = arith.constant 0 : index
    %c0_37 = arith.constant 0 : index
    %77 = vector.load %arg11[%c0_36, %c0_37] : memref<1x128xf32, #tpu.memory_space<vmem>>, vector<1x128xf32>
    %78 = arith.truncf %72 : vector<8x32xf32> to vector<8x32xbf16>
    %cst_38 = arith.constant dense<0.000000e+00> : vector<8x32xf32>
    %79 = tpu.matmul %78, %75, %cst_38 {dimension_numbers = #tpu.dot_dimension_numbers<[1], [0], [0], [1], [0, 0, 1, 1], [], []>} : vector<8x32xbf16>, vector<32x32xbf16>, vector<8x32xf32> -> vector<8x32xf32>
    %80 = vector.extract_strided_slice %77 {offsets = [0, 0], sizes = [1, 32], strides = [1, 1]} : vector<1x128xf32> to vector<1x32xf32>
    %81 = vector.broadcast %80 : vector<1x32xf32> to vector<8x32xf32>
    %82 = arith.addf %79, %81 : vector<8x32xf32>
    %cst_39 = arith.constant 0.353553385 : f32
    %83 = vector.broadcast %cst_39 : f32 to vector<8x32xf32>
    %84 = arith.mulf %82, %83 : vector<8x32xf32>
    %85 = arith.truncf %84 : vector<8x32xf32> to vector<8x32xbf16>
    %86 = vector.shape_cast %85 : vector<8x32xbf16> to vector<8x4x8xbf16>
    %87 = tpu.transpose %86, [1, 0, 2] : vector<8x4x8xbf16> -> vector<4x8x8xbf16>
    %88 = vector.shape_cast %73 : vector<8x32xbf16> to vector<8x4x8xbf16>
    %89 = tpu.transpose %88, [1, 0, 2] : vector<8x4x8xbf16> -> vector<4x8x8xbf16>
    %90 = vector.shape_cast %74 : vector<8x32xbf16> to vector<8x4x8xbf16>
    %91 = tpu.transpose %90, [1, 0, 2] : vector<8x4x8xbf16> -> vector<4x8x8xbf16>
    %cst_40 = arith.constant dense<0.000000e+00> : vector<4x8x8xf32>
    %92 = tpu.matmul %87, %89, %cst_40 {dimension_numbers = #tpu.dot_dimension_numbers<[2], [2], [1], [1], [0, 0, 0, 1, 1, 1], [0], [0]>} : vector<4x8x8xbf16>, vector<4x8x8xbf16>, vector<4x8x8xf32> -> vector<4x8x8xf32>
    %cst_41 = arith.constant dense<0xFF800000> : vector<4x8xf32>
    %93 = vector.multi_reduction <maximumf>, %92, %cst_41 [2] : vector<4x8x8xf32> to vector<4x8xf32>
    %94 = vector.shape_cast %93 : vector<4x8xf32> to vector<4x8x1xf32>
    %95 = vector.broadcast %94 : vector<4x8x1xf32> to vector<4x8x8xf32>
    %96 = arith.subf %92, %95 : vector<4x8x8xf32>
    %97 = math.exp %96 : vector<4x8x8xf32>
    %cst_42 = arith.constant dense<0.000000e+00> : vector<4x8xf32>
    %98 = vector.multi_reduction <add>, %97, %cst_42 [2] : vector<4x8x8xf32> to vector<4x8xf32>
    %99 = vector.shape_cast %98 : vector<4x8xf32> to vector<4x8x1xf32>
    %100 = tpu.reciprocal %99 {approx = true} : vector<4x8x1xf32> -> vector<4x8x1xf32>
    %101 = vector.broadcast %100 : vector<4x8x1xf32> to vector<4x8x8xf32>
    %102 = arith.mulf %97, %101 : vector<4x8x8xf32>
    %103 = arith.truncf %102 : vector<4x8x8xf32> to vector<4x8x8xbf16>
    %c0_43 = arith.constant 0 : index
    %c0_44 = arith.constant 0 : index
    %c0_45 = arith.constant 0 : index
    %c0_46 = arith.constant 0 : index
    %104 = vector.load %arg19[%c0_43, %c0_44, %c0_45, %c0_46] : memref<1x4x8x8xbf16, #tpu.memory_space<vmem>>, vector<1x4x8x8xbf16>
    %105 = vector.shape_cast %104 : vector<1x4x8x8xbf16> to vector<4x8x8xbf16>
    %106 = vector.shape_cast %103 : vector<4x8x8xbf16> to vector<1x4x8x8xbf16>
    tpu.vector_store %arg19[%c0_43, %c0_44, %c0_45, %c0_46], %106 {strides = array<i32>} : memref<1x4x8x8xbf16, #tpu.memory_space<vmem>>, vector<1x4x8x8xbf16>,
    %107 = arith.truncf %102 : vector<4x8x8xf32> to vector<4x8x8xbf16>
    %cst_47 = arith.constant dense<0.000000e+00> : vector<4x8x8xf32>
    %108 = tpu.matmul %107, %91, %cst_47 {dimension_numbers = #tpu.dot_dimension_numbers<[2], [1], [1], [2], [0, 0, 0, 1, 1, 2], [0], [0]>} : vector<4x8x8xbf16>, vector<4x8x8xbf16>, vector<4x8x8xf32> -> vector<4x8x8xf32>
    %109 = arith.truncf %108 : vector<4x8x8xf32> to vector<4x8x8xbf16>
    %110 = tpu.transpose %109, [1, 0, 2] : vector<4x8x8xbf16> -> vector<8x4x8xbf16>
    %111 = vector.shape_cast %110 : vector<8x4x8xbf16> to vector<8x32xbf16>
    %cst_48 = arith.constant dense<0.000000e+00> : vector<8x32xf32>
    %112 = tpu.matmul %111, %76, %cst_48 {dimension_numbers = #tpu.dot_dimension_numbers<[1], [0], [0], [1], [0, 0, 1, 1], [], []>} : vector<8x32xbf16>, vector<32x32xbf16>, vector<8x32xf32> -> vector<8x32xf32>
    %113 = vector.extract_strided_slice %77 {offsets = [0, 96], sizes = [1, 32], strides = [1, 1]} : vector<1x128xf32> to vector<1x32xf32>
    %114 = vector.broadcast %113 : vector<1x32xf32> to vector<8x32xf32>
    %115 = arith.addf %112, %114 : vector<8x32xf32>
    %116 = arith.addf %72, %115 : vector<8x32xf32>
    %c1 = arith.constant 1 : index
    %c0_49 = arith.constant 0 : index
    %117 = vector.load %arg16[%c1, %c0_49] : memref<3x32xf32, #tpu.memory_space<vmem>>, vector<1x32xf32>
    %c1_50 = arith.constant 1 : index
    %c0_51 = arith.constant 0 : index
    %118 = vector.load %arg17[%c1_50, %c0_51] : memref<3x32xf32, #tpu.memory_space<vmem>>, vector<1x32xf32>
    %cst_52 = arith.constant dense<0.000000e+00> : vector<8xf32>
    %119 = vector.multi_reduction <add>, %116, %cst_52 [1] : vector<8x32xf32> to vector<8xf32>
    %120 = vector.shape_cast %119 : vector<8xf32> to vector<8x1xf32>
    %cst_53 = arith.constant 3.125000e-02 : f32
    %121 = vector.broadcast %cst_53 : f32 to vector<8x1xf32>
    %122 = arith.mulf %120, %121 : vector<8x1xf32>
    %123 = vector.broadcast %122 : vector<8x1xf32> to vector<8x32xf32>
    %124 = arith.subf %116, %123 : vector<8x32xf32>
    %125 = arith.mulf %124, %124 : vector<8x32xf32>
    %cst_54 = arith.constant dense<0.000000e+00> : vector<8xf32>
    %126 = vector.multi_reduction <add>, %125, %cst_54 [1] : vector<8x32xf32> to vector<8xf32>
    %127 = vector.shape_cast %126 : vector<8xf32> to vector<8x1xf32>
    %cst_55 = arith.constant 0.0322580636 : f32
    %128 = vector.broadcast %cst_55 : f32 to vector<8x1xf32>
    %129 = arith.mulf %127, %128 : vector<8x1xf32>
    %130 = math.sqrt %129 : vector<8x1xf32>
    %cst_56 = arith.constant 9.99999996E-13 : f32
    %131 = vector.broadcast %cst_56 : f32 to vector<8x1xf32>
    %132 = arith.addf %130, %131 : vector<8x1xf32>
    %cst_57 = arith.constant 1.000000e+00 : f32
    %133 = vector.broadcast %cst_57 : f32 to vector<8x1xf32>
    %134 = arith.divf %133, %132 : vector<8x1xf32>
    %135 = vector.broadcast %134 : vector<8x1xf32> to vector<8x32xf32>
    %136 = arith.mulf %124, %135 : vector<8x32xf32>
    %137 = vector.broadcast %117 : vector<1x32xf32> to vector<8x32xf32>
    %138 = arith.mulf %137, %136 : vector<8x32xf32>
    %139 = vector.broadcast %118 : vector<1x32xf32> to vector<8x32xf32>
    %140 = arith.addf %138, %139 : vector<8x32xf32>
    %141 = arith.truncf %140 : vector<8x32xf32> to vector<8x32xbf16>
    %c0_58 = arith.constant 0 : index
    %c0_59 = arith.constant 0 : index
    %142 = vector.load %arg12[%c0_58, %c0_59] : memref<32x64xbf16, #tpu.memory_space<vmem>>, vector<32x64xbf16>
    %cst_60 = arith.constant dense<0.000000e+00> : vector<8x64xf32>
    %143 = tpu.matmul %141, %142, %cst_60 {dimension_numbers = #tpu.dot_dimension_numbers<[1], [0], [0], [1], [0, 0, 1, 1], [], []>} : vector<8x32xbf16>, vector<32x64xbf16>, vector<8x64xf32> -> vector<8x64xf32>
    %c0_61 = arith.constant 0 : index
    %c0_62 = arith.constant 0 : index
    %144 = vector.load %arg13[%c0_61, %c0_62] : memref<1x64xf32, #tpu.memory_space<vmem>>, vector<1x64xf32>
    %145 = vector.broadcast %144 : vector<1x64xf32> to vector<8x64xf32>
    %146 = arith.addf %143, %145 : vector<8x64xf32>
    %cst_63 = arith.constant 0.000000e+00 : f32
    %147 = vector.broadcast %cst_63 : f32 to vector<8x64xf32>
    %148 = arith.maximumf %146, %147 : vector<8x64xf32>
    %149 = arith.truncf %148 : vector<8x64xf32> to vector<8x64xbf16>
    %c0_64 = arith.constant 0 : index
    %c0_65 = arith.constant 0 : index
    %150 = vector.load %arg14[%c0_64, %c0_65] : memref<64x32xbf16, #tpu.memory_space<vmem>>, vector<64x32xbf16>
    %cst_66 = arith.constant dense<0.000000e+00> : vector<8x32xf32>
    %151 = tpu.matmul %149, %150, %cst_66 {dimension_numbers = #tpu.dot_dimension_numbers<[1], [0], [0], [1], [0, 0, 1, 1], [], []>} : vector<8x64xbf16>, vector<64x32xbf16>, vector<8x32xf32> -> vector<8x32xf32>
    %c0_67 = arith.constant 0 : index
    %c0_68 = arith.constant 0 : index
    %152 = vector.load %arg15[%c0_67, %c0_68] : memref<1x32xf32, #tpu.memory_space<vmem>>, vector<1x32xf32>
    %153 = vector.broadcast %152 : vector<1x32xf32> to vector<8x32xf32>
    %154 = arith.addf %151, %153 : vector<8x32xf32>
    %155 = arith.addf %140, %154 : vector<8x32xf32>
    %c2 = arith.constant 2 : index
    %c0_69 = arith.constant 0 : index
    %156 = vector.load %arg16[%c2, %c0_69] : memref<3x32xf32, #tpu.memory_space<vmem>>, vector<1x32xf32>
    %c2_70 = arith.constant 2 : index
    %c0_71 = arith.constant 0 : index
    %157 = vector.load %arg17[%c2_70, %c0_71] : memref<3x32xf32, #tpu.memory_space<vmem>>, vector<1x32xf32>
    %cst_72 = arith.constant dense<0.000000e+00> : vector<8xf32>
    %158 = vector.multi_reduction <add>, %155, %cst_72 [1] : vector<8x32xf32> to vector<8xf32>
    %159 = vector.shape_cast %158 : vector<8xf32> to vector<8x1xf32>
    %cst_73 = arith.constant 3.125000e-02 : f32
    %160 = vector.broadcast %cst_73 : f32 to vector<8x1xf32>
    %161 = arith.mulf %159, %160 : vector<8x1xf32>
    %162 = vector.broadcast %161 : vector<8x1xf32> to vector<8x32xf32>
    %163 = arith.subf %155, %162 : vector<8x32xf32>
    %164 = arith.mulf %163, %163 : vector<8x32xf32>
    %cst_74 = arith.constant dense<0.000000e+00> : vector<8xf32>
    %165 = vector.multi_reduction <add>, %164, %cst_74 [1] : vector<8x32xf32> to vector<8xf32>
    %166 = vector.shape_cast %165 : vector<8xf32> to vector<8x1xf32>
    %cst_75 = arith.constant 0.0322580636 : f32
    %167 = vector.broadcast %cst_75 : f32 to vector<8x1xf32>
    %168 = arith.mulf %166, %167 : vector<8x1xf32>
    %169 = math.sqrt %168 : vector<8x1xf32>
    %cst_76 = arith.constant 9.99999996E-13 : f32
    %170 = vector.broadcast %cst_76 : f32 to vector<8x1xf32>
    %171 = arith.addf %169, %170 : vector<8x1xf32>
    %cst_77 = arith.constant 1.000000e+00 : f32
    %172 = vector.broadcast %cst_77 : f32 to vector<8x1xf32>
    %173 = arith.divf %172, %171 : vector<8x1xf32>
    %174 = vector.broadcast %173 : vector<8x1xf32> to vector<8x32xf32>
    %175 = arith.mulf %163, %174 : vector<8x32xf32>
    %176 = vector.broadcast %156 : vector<1x32xf32> to vector<8x32xf32>
    %177 = arith.mulf %176, %175 : vector<8x32xf32>
    %178 = vector.broadcast %157 : vector<1x32xf32> to vector<8x32xf32>
    %179 = arith.addf %177, %178 : vector<8x32xf32>
    %c0_78 = arith.constant 0 : index
    %c0_79 = arith.constant 0 : index
    %c0_80 = arith.constant 0 : index
    %180 = vector.load %arg18[%c0_78, %c0_79, %c0_80] : memref<1x8x32xf32, #tpu.memory_space<vmem>>, vector<1x8x32xf32>
    %181 = vector.shape_cast %180 : vector<1x8x32xf32> to vector<8x32xf32>
    %182 = vector.shape_cast %179 : vector<8x32xf32> to vector<1x8x32xf32>
    tpu.vector_store %arg18[%c0_78, %c0_79, %c0_80], %182 {strides = array<i32>} : memref<1x8x32xf32, #tpu.memory_space<vmem>>, vector<1x8x32xf32>,
    return
  }
  func.func @transform_0(%arg0: i32, %arg1: i32) -> (i32, i32, i32) {
    %c0_i32 = arith.constant 0 : i32
    %c0_i32_0 = arith.constant 0 : i32
    %c0_i32_1 = arith.constant 0 : i32
    return %arg0, %c0_i32, %c0_i32_0 : i32, i32, i32
  }
  func.func @transform_1(%arg0: i32, %arg1: i32) -> (i32, i32, i32) {
    %c0_i32 = arith.constant 0 : i32
    %c0_i32_0 = arith.constant 0 : i32
    %c0_i32_1 = arith.constant 0 : i32
    return %arg0, %c0_i32, %c0_i32_0 : i32, i32, i32
  }
  func.func @transform_2(%arg0: i32, %arg1: i32) -> (i32, i32) {
    %c0_i32 = arith.constant 0 : i32
    %c0_i32_0 = arith.constant 0 : i32
    %c0_i32_1 = arith.constant 0 : i32
    return %c0_i32, %c0_i32_0 : i32, i32
  }
  func.func @transform_3(%arg0: i32, %arg1: i32) -> (i32, i32) {
    %c0_i32 = arith.constant 0 : i32
    %c0_i32_0 = arith.constant 0 : i32
    %c0_i32_1 = arith.constant 0 : i32
    return %c0_i32, %c0_i32_0 : i32, i32
  }
  func.func @transform_4(%arg0: i32, %arg1: i32) -> (i32, i32) {
    %c0_i32 = arith.constant 0 : i32
    %c0_i32_0 = arith.constant 0 : i32
    %c0_i32_1 = arith.constant 0 : i32
    return %c0_i32, %c0_i32_0 : i32, i32
  }
  func.func @transform_5(%arg0: i32, %arg1: i32) -> (i32, i32) {
    %c0_i32 = arith.constant 0 : i32
    %c0_i32_0 = arith.constant 0 : i32
    %c0_i32_1 = arith.constant 0 : i32
    return %c0_i32, %c0_i32_0 : i32, i32
  }
  func.func @transform_6(%arg0: i32, %arg1: i32) -> (i32, i32) {
    %c0_i32 = arith.constant 0 : i32
    %c0_i32_0 = arith.constant 0 : i32
    %c0_i32_1 = arith.constant 0 : i32
    return %c0_i32, %c0_i32_0 : i32, i32
  }
  func.func @transform_7(%arg0: i32, %arg1: i32) -> (i32, i32) {
    %c0_i32 = arith.constant 0 : i32
    %c0_i32_0 = arith.constant 0 : i32
    %c0_i32_1 = arith.constant 0 : i32
    return %c0_i32, %c0_i32_0 : i32, i32
  }
  func.func @transform_8(%arg0: i32, %arg1: i32) -> (i32, i32) {
    %c0_i32 = arith.constant 0 : i32
    %c0_i32_0 = arith.constant 0 : i32
    %c0_i32_1 = arith.constant 0 : i32
    return %c0_i32, %c0_i32_0 : i32, i32
  }
  func.func @transform_9(%arg0: i32, %arg1: i32) -> (i32, i32) {
    %c0_i32 = arith.constant 0 : i32
    %c0_i32_0 = arith.constant 0 : i32
    %c0_i32_1 = arith.constant 0 : i32
    return %c0_i32, %c0_i32_0 : i32, i32
  }
  func.func @transform_10(%arg0: i32, %arg1: i32) -> (i32, i32) {
    %c0_i32 = arith.constant 0 : i32
    %c0_i32_0 = arith.constant 0 : i32
    %c0_i32_1 = arith.constant 0 : i32
    return %c0_i32, %c0_i32_0 : i32, i32
  }
  func.func @transform_11(%arg0: i32, %arg1: i32) -> (i32, i32) {
    %c0_i32 = arith.constant 0 : i32
    %c0_i32_0 = arith.constant 0 : i32
    %c0_i32_1 = arith.constant 0 : i32
    return %c0_i32, %c0_i32_0 : i32, i32
  }
  func.func @transform_12(%arg0: i32, %arg1: i32) -> (i32, i32) {
    %c0_i32 = arith.constant 0 : i32
    %c0_i32_0 = arith.constant 0 : i32
    %c0_i32_1 = arith.constant 0 : i32
    return %c0_i32, %c0_i32_0 : i32, i32
  }
  func.func @transform_13(%arg0: i32, %arg1: i32) -> (i32, i32) {
    %c0_i32 = arith.constant 0 : i32
    %c0_i32_0 = arith.constant 0 : i32
    %c0_i32_1 = arith.constant 0 : i32
    return %c0_i32, %c0_i32_0 : i32, i32
  }
  func.func @transform_14(%arg0: i32, %arg1: i32) -> (i32, i32) {
    %c0_i32 = arith.constant 0 : i32
    %c0_i32_0 = arith.constant 0 : i32
    %c0_i32_1 = arith.constant 0 : i32
    return %c0_i32, %c0_i32_0 : i32, i32
  }
  func.func @transform_15(%arg0: i32, %arg1: i32) -> (i32, i32) {
    %c0_i32 = arith.constant 0 : i32
    %c0_i32_0 = arith.constant 0 : i32
    %c0_i32_1 = arith.constant 0 : i32
    return %c0_i32, %c0_i32_0 : i32, i32
  }
  func.func @transform_16(%arg0: i32, %arg1: i32) -> (i32, i32, i32) {
    %c0_i32 = arith.constant 0 : i32
    %c0_i32_0 = arith.constant 0 : i32
    return %arg0, %arg1, %c0_i32 : i32, i32, i32
  }
  func.func @transform_17(%arg0: i32, %arg1: i32) -> (i32, i32, i32, i32) {
    %c0_i32 = arith.constant 0 : i32
    %c0_i32_0 = arith.constant 0 : i32
    %c0_i32_1 = arith.constant 0 : i32
    return %arg0, %c0_i32, %arg1, %c0_i32_0 : i32, i32, i32, i32
  }
}

</mosaic_0001>

<bundles_post_ra>
// kernel: tpu_custom_call.1
= control target key start
LH: loop header
LB: loop body
LE: loop exit
PB: predicated region body
PF: predicated region fallthrough
CT: control target
= control target key end

     0   :  { %s5569_s0 = inlined_call_operand.hbm [shape: bf16[2,8,32], index: 0, kind: input, shape index: {}]   ;;  %s5570_s1 = inlined_call_operand.hbm [shape: bf16[2,8,32], index: 1, kind: input, shape index: {}]   ;;  %s5571_s2 = inlined_call_operand.vmem [shape: bf16[32,32], index: 2, kind: input, shape index: {}]   ;;  %s5572_s3 = inlined_call_operand.vmem [shape: bf16[32,64], index: 3, kind: input, shape index: {}]   ;;  %s5573_s4 = inlined_call_operand.vmem [shape: bf16[32,32], index: 4, kind: input, shape index: {}]   ;;  %s5574_s5 = inlined_call_operand.vmem [shape: f32[1,128], index: 5, kind: input, shape index: {}]   ;;  %s5575_s6 = inlined_call_operand.hbm [shape: bf16[32,32], index: 6, kind: input, shape index: {}]   ;;  %s5576_s7 = inlined_call_operand.hbm [shape: bf16[32,64], index: 7, kind: input, shape index: {}]   ;;  %s5577_s8 = inlined_call_operand.hbm [shape: bf16[32,32], index: 8, kind: input, shape index: {}]   ;;  %s5578_s9 = inlined_call_operand.hbm [shape: f32[1,128], index: 9, kind: input, shape index: {}]   ;;  %s5579_s10 = inlined_call_operand.vmem [shape: bf16[32,64], index: 10, kind: input, shape index: {}]   ;;  %s5580_s11 = inlined_call_operand.hbm [shape: f32[1,64], index: 11, kind: input, shape index: {}]   ;;  %s5581_s12 = inlined_call_operand.vmem [shape: bf16[64,32], index: 12, kind: input, shape index: {}]   ;;  %s5582_s13 = inlined_call_operand.vmem [shape: f32[1,32], index: 13, kind: input, shape index: {}]   ;;  %s5583_s14 = inlined_call_operand.vmem [shape: f32[3,32], index: 14, kind: input, shape index: {}]   ;;  %s5584_s15 = inlined_call_operand.vmem [shape: f32[3,32], index: 15, kind: input, shape index: {}]   ;;  %s5585_s16 = inlined_call_operand.hbm [shape: f32[2,8,32], index: 16, kind: output, shape index: {0}]   ;;  %s5586_s17 = inlined_call_operand.hbm [shape: bf16[2,4,8,8], index: 17, kind: output, shape index: {1}]  }
   0x1   :  { %5604 = sst [smem:[#allocation31_spill]] %s5569_s0 }
   0x2   :  { %5605 = sst [smem:[#allocation32_spill]] %s5570_s1 }
   0x3   :  { %5606 = sst [smem:[#allocation33_spill]] %s5571_s2 }
   0x4   :  { %5607 = sst [smem:[#allocation34_spill]] %s5573_s4 }
   0x5   :  { %5608 = sst [smem:[#allocation35_spill]] %s5575_s6 }
   0x6   :  { %5609 = sst [smem:[#allocation36_spill]] %s5576_s7 }
   0x7   :  { %5610 = sst [smem:[#allocation37_spill]] %s5577_s8 }
   0x8   :  { %5611 = sst [smem:[#allocation38_spill]] %s5578_s9 }
   0x9   :  { %5612 = sst [smem:[#allocation39_spill]] %s5579_s10 }
   0xa   :  { %5613 = sst [smem:[#allocation40_spill]] %s5580_s11 }
   0xb   :  { %5614 = sst [smem:[#allocation41_spill]] %s5581_s12 }
   0xc   :  { %5615 = sst [smem:[#allocation42_spill]] %s5582_s13 }
   0xd   :  { %5616 = sst [smem:[#allocation43_spill]] %s5583_s14 }
   0xe   :  { %5617 = sst [smem:[#allocation44_spill]] %s5584_s15 }
   0xf   :  { %5618 = sst [smem:[#allocation45_spill]] %s5585_s16 }
  0x10   :  { %5619 = sst [smem:[#allocation46_spill]] %s5586_s17 }
  0x11   :  { %23 = vsyncpa [#allocation7], 0 }
  0x12   :  { %25 = vsyncpa [#allocation7 + $0x1], 0 }
  0x13   :  { %26 = vsyncpa [#allocation10], 0 }
  0x14   :  { %28 = vsyncpa [#allocation10 + $0x1], 0 }
  0x15   :  { %29 = vsyncpa [#allocation13], 0 }
  0x16   :  { %30 = vsyncpa [#allocation16], 0 }
  0x17   :  { %31 = vsyncpa [#allocation8], 0 }
  0x18   :  { %33 = vsyncpa [#allocation8 + $0x1], 0 }
  0x19   :  { %34 = vsyncpa [#allocation20], 0 }
  0x1a   :  { %36 = vsyncpa [#allocation20 + $0x1], 0  ;;  %s4699_s24 = smov 0   ;;  %s4701_s25 = smov 0  }
  0x1b   :  { %s4703_s26 = smov 0   ;;  %s4705_s27 = smov 0  }
  0x1c   :  { %s4707_s28 = smov 0   ;;  %s4709_s29 = smov 0  }
  0x1d LB: > { %5620 = sst [smem:[#allocation28_spill]] %s4573_s27  ;;  %s4730_s0 = sadd.s32 4294967295, %s4581_s29   ;;  %s4581_s29 = sphi %s4709_s29, %s42_s29   ;;  %s4577_s28 = sphi %s4707_s28, %s5664_s28   ;;  %s4573_s27 = sphi %s4705_s27, %s5663_s27   ;;  %s4569_s26 = sphi %s4703_s26, %s5667_s26   ;;  %s4565_s25 = sphi %s4701_s25, %s5666_s25   ;;  %s4561_s24 = sphi %s4699_s24, %s5665_s24  }
  0x1e   : > { %5621 = sst [smem:[#allocation29_spill]] %s4577_s28  ;;  %p3732_p0 = scmp.ge.s32.totalorder %s4581_s29, 1 }
  0x1f   : > { %p5597_p1 = scmp.eq.s32.totalorder %s4730_s0, 0  ;;  %p461_p2 = scmp.lt.s32.totalorder %s4581_s29, 3 }
  0x20   : > { %s4583_s18 = smov [#allocation11]   ;;  %s4584_s20 = smov [#allocation12]  }
  0x21   : > { %p4735_p3 = pnand %p3732_p0, %p461_p2  ;;  %s485_s19 = sshll.u32 %s4583_s18, 4  ;;  %s4739_s19 = int_to_ptr.vmem [resolvable:$true] %s485_s19 }
  0x22   : > { %s498_s21 = sshll.u32 %s4584_s20, 4  ;;  %s4585_s22 = smov [#allocation15]   ;;  %s4750_s21 = int_to_ptr.vmem [resolvable:$true] %s498_s21 }
  0x23   : > { %s5622_s30 = scalar_select %p4735_p3, 1, 0 }
  0x24   : > { %p4077_p4 = pneg %p4735_p3  ;;  %s4752_s23 = sshll.u32 %s4585_s22, 4  ;;  %s526_s23 = int_to_ptr.vmem [resolvable:$true] %s4752_s23 }
  0x25   : > { %s5624_s6 = sld [smem:[#allocation35_spill]] }
  0x26   : > { %p4746_p6 = pnand %p4077_p4, %p5597_p1 }
  0x28   : > { %p4762_p8 = pneg %p4746_p6 }
  0x2b   : > { %s4251_s17 = scalar_lea.hbm %s5624_s6, 256 }
  0x2c   : > { %p4252_p7 = scmp.ne.s32.totalorder %s5624_s6, %s4251_s17  ;;  %p4258_p11 = scmp.lt.u32.totalorder %s4251_s17, %s5624_s6 }
  0x2e   : > { %p4254_p9 = pnand %p4762_p8, %p4252_p7 }
  0x30   : > { %p4255_p10 = pneg %p4254_p9 }
  0x32   : > { %p4260_p12 = pnand %p4258_p11, %p4255_p10 }
  0x34   : > { %4263 = shalt.err (!%p4260_p12)
}
  0x35   : > { %s4264_s13 = scalar_lea.vmem %s4739_s19, 256  ;;  %p4272_p4 = scmp.lt.s32.totalorder %s4739_s19, %s4739_s19 }
  0x36   : > { %p4265_p13 = scmp.ne.s32.totalorder %s4739_s19, %s4264_s13  ;;  %p4273_p5 = scmp.lt.s32.totalorder %s4264_s13, %s4264_s13 }
  0x38   : > { %p4267_p0 = pnand %p4265_p13, %p4762_p8  ;;  %p4274_p7 = por %p4273_p5, %p4272_p4 }
  0x3a   : > { %p4268_p2 = pneg %p4267_p0 }
  0x3c   : > { %p4275_p9 = pnand %p4274_p7, %p4268_p2 }
  0x3e   : > { %4278 = shalt.err (!%p4275_p9)
}
  0x3f   : > { %s5599_s16 = smov 64   ;;  %s4587_s17 = smov 4  }
  0x40   : > { %4080 = dma.hbm_to_vmem [thread:$0]  (!%p4746_p6), %s5624_s6, 256, %s4739_s19, [#allocation10], %s5599_s16, %s5599_s16, %s4587_s17  }
  0x41   : > { %s5626_s7 = sld [smem:[#allocation36_spill]] }
  0x47   : > { %s4279_s13 = scalar_lea.hbm %s5626_s7, 256 }
  0x48   : > { %p4280_p5 = scmp.ne.s32.totalorder %s5626_s7, %s4279_s13  ;;  %p4286_p12 = scmp.lt.u32.totalorder %s4279_s13, %s5626_s7 }
  0x4a   : > { %p4282_p10 = pnand %p4280_p5, %p4762_p8 }
  0x4c   : > { %p4283_p11 = pneg %p4282_p10 }
  0x4e   : > { %p4288_p13 = pnand %p4286_p12, %p4283_p11 }
  0x50   : > { %4291 = shalt.err (!%p4288_p13)
}
  0x51   : > { %s4292_s19 = scalar_lea.vmem %s4750_s21, 256  ;;  %p4300_p7 = scmp.lt.s32.totalorder %s4750_s21, %s4750_s21 }
  0x52   : > { %p4293_p0 = scmp.ne.s32.totalorder %s4750_s21, %s4292_s19  ;;  %p4301_p9 = scmp.lt.s32.totalorder %s4292_s19, %s4292_s19 }
  0x54   : > { %p4295_p2 = pnand %p4293_p0, %p4762_p8  ;;  %p4302_p5 = por %p4301_p9, %p4300_p7 }
  0x56   : > { %p4296_p4 = pneg %p4295_p2 }
  0x58   : > { %p4303_p10 = pnand %p4302_p5, %p4296_p4 }
  0x5a   : > { %4306 = shalt.err (!%p4303_p10)
}
  0x5b   : > { %4083 = dma.hbm_to_vmem [thread:$0]  (!%p4746_p6), %s5626_s7, 256, %s4750_s21, [#allocation13], %s5599_s16, %s5599_s16, %s4587_s17  }
  0x5c   : > { %s5627_s9 = sld [smem:[#allocation38_spill]] }
  0x62   : > { %s4307_s27 = scalar_lea.hbm %s5627_s9, 16 }
  0x63   : > { %p4308_p11 = scmp.ne.s32.totalorder %s5627_s9, %s4307_s27  ;;  %p4314_p0 = scmp.lt.u32.totalorder %s4307_s27, %s5627_s9 }
  0x65   : > { %p4310_p12 = pnand %p4308_p11, %p4762_p8 }
  0x67   : > { %p4311_p13 = pneg %p4310_p12 }
  0x69   : > { %p4316_p2 = pnand %p4314_p0, %p4311_p13 }
  0x6b   : > { %4319 = shalt.err (!%p4316_p2)
}
  0x6c   : > { %s4320_s19 = scalar_lea.vmem %s526_s23, 16  ;;  %s4327_s21 = scalar_lea.vmem %s526_s23, 32 }
  0x6d   : > { %p4321_p4 = scmp.ne.s32.totalorder %s526_s23, %s4320_s19  ;;  %p4328_p5 = scmp.lt.s32.totalorder %s526_s23, %s526_s23 }
  0x6e   : > { %p4329_p10 = scmp.lt.s32.totalorder %s4327_s21, %s4320_s19 }
  0x6f   : > { %p4323_p7 = pnand %p4321_p4, %p4762_p8 }
  0x70   : > { %p4330_p1 = por %p4329_p10, %p4328_p5 }
  0x71   : > { %p4324_p9 = pneg %p4323_p7 }
  0x73   : > { %p4331_p3 = pnand %p4330_p1, %p4324_p9 }
  0x75   : > { %4334 = shalt.err (!%p4331_p3)
}
  0x76   : > { %4089 = dma.hbm_to_vmem [thread:$0]  (!%p4746_p6), %s5627_s9, 16, %s526_s23, [#allocation16]  }
  0x77   : > { %s4588_s14 = smov [#allocation14]   ;;  %s4589_s27 = smov [#allocation17]  }
  0x78   : > { %s511_s15 = sshll.u32 %s4588_s14, 4  ;;  %s539_s18 = sshll.u32 %s4589_s27, 4  ;;  %s512_s15 = int_to_ptr.vmem [resolvable:$true] %s511_s15  ;;  %s540_s18 = int_to_ptr.vmem [resolvable:$true] %s539_s18 }
  0x79   : > { %s5628_s8 = sld [smem:[#allocation37_spill]] }
  0x7f   : > { %s4335_s13 = scalar_lea.hbm %s5628_s8, 256 }
  0x80   : > { %p4336_p1 = scmp.ne.s32.totalorder %s5628_s8, %s4335_s13  ;;  %p4342_p12 = scmp.lt.u32.totalorder %s4335_s13, %s5628_s8 }
  0x82   : > { %p4338_p3 = pnand %p4336_p1, %p4762_p8 }
  0x84   : > { %p4339_p11 = pneg %p4338_p3 }
  0x86   : > { %p4344_p13 = pnand %p4342_p12, %p4339_p11 }
  0x88   : > { %4347 = shalt.err (!%p4344_p13)
}
  0x89   : > { %s4348_s23 = scalar_lea.vmem %s512_s15, 256  ;;  %p4356_p7 = scmp.lt.s32.totalorder %s512_s15, %s512_s15 }
  0x8a   : > { %p4349_p0 = scmp.ne.s32.totalorder %s512_s15, %s4348_s23  ;;  %p4357_p9 = scmp.lt.s32.totalorder %s4348_s23, %s4348_s23 }
  0x8c   : > { %p4351_p2 = pnand %p4349_p0, %p4762_p8  ;;  %p4358_p5 = por %p4357_p9, %p4356_p7 }
  0x8e   : > { %p4352_p4 = pneg %p4351_p2 }
  0x90   : > { %p4359_p10 = pnand %p4358_p5, %p4352_p4 }
  0x92   : > { %4362 = shalt.err (!%p4359_p10)
}
  0x93   : > { %s5629_s10 = smov 64   ;;  %s5630_s11 = sld [smem:[#allocation40_spill]] }
  0x94   : > { %4086 = dma.hbm_to_vmem [thread:$0]  (!%p4746_p6), %s5628_s8, 256, %s512_s15, [#allocation13], %s5629_s10, %s5629_s10, %s4587_s17  }
  0x99   : > { %s4363_s22 = scalar_lea.hbm %s5630_s11, 16 }
  0x9a   : > { %p4364_p1 = scmp.ne.s32.totalorder %s5630_s11, %s4363_s22  ;;  %p4370_p12 = scmp.lt.u32.totalorder %s4363_s22, %s5630_s11 }
  0x9c   : > { %p4366_p3 = pnand %p4364_p1, %p4762_p8 }
  0x9e   : > { %p4367_p11 = pneg %p4366_p3 }
  0xa0   : > { %p4372_p13 = pnand %p4370_p12, %p4367_p11 }
  0xa2   : > { %4375 = shalt.err (!%p4372_p13)
}
  0xa3   : > { %s4376_s23 = scalar_lea.vmem %s540_s18, 16  ;;  %s4383_s17 = scalar_lea.vmem %s540_s18, 32 }
  0xa4   : > { %p4377_p0 = scmp.ne.s32.totalorder %s540_s18, %s4376_s23  ;;  %p4384_p7 = scmp.lt.s32.totalorder %s540_s18, %s540_s18 }
  0xa5   : > { %p4385_p9 = scmp.lt.s32.totalorder %s4383_s17, %s4376_s23 }
  0xa6   : > { %p4379_p2 = pnand %p4377_p0, %p4762_p8 }
  0xa7   : > { %p4386_p5 = por %p4385_p9, %p4384_p7 }
  0xa8   : > { %p4380_p4 = pneg %p4379_p2 }
  0xaa   : > { %p4387_p10 = pnand %p4386_p5, %p4380_p4 }
  0xac   : > { %4390 = shalt.err (!%p4387_p10)
}
  0xad   : > { %4092 = dma.hbm_to_vmem [thread:$0]  (!%p4746_p6), %s5630_s11, 16, %s540_s18, [#allocation16]  }
  0xae   : > { %s3731_s12 = sadd.s32 4294967294, %s4581_s29   ;;  %s54_s16 = sadd.s32 1, %s4577_s28 }
  0xaf   : > { %s61_s1 = sadd.s32 1, %s4569_s26  ;;  %p56_p8 = scmp.ge.s32.totalorder %s54_s16, 2 }
  0xb0   : > { %p68_p1 = scmp.ne.s32.totalorder %s4569_s26, %s4565_s25  ;;  %p69_p3 = scmp.eq.s32.totalorder %s4581_s29, 0 }
  0xb1   : > { %p74_p11 = scmp.ne.s32.totalorder %s4565_s25, %s4561_s24  ;;  %s5669_s16 = smov (%p56_p8, %s54_s16), 0 }
  0xb2   : > { %5631 = sst [smem:[#allocation30_spill]] %s5669_s16  ;;  %p4880_p12 = por %p69_p3, %p68_p1 }
  0xb3   : > { %p5633_p13 = scmp.eq.s32.totalorder %s4730_s0, 0  ;;  %s58_s27 = ssub.s32 %s4577_s28, %s5669_s16 }
  0xb4   : > { %p420_p0 = scmp.eq.s32.totalorder %s4730_s0, 1  ;;  %p59_p2 = scmp.eq.s32.totalorder %s58_s27, 0 }
  0xb5   : > { %p4886_p6 = por %p5633_p13, %p74_p11  ;;  %p426_p4 = scmp.eq.s32.totalorder %s3731_s12, 1 }
  0xb6   : > { %p4893_p7 = por %p420_p0, %p68_p1  ;;  %p4112_p9 = scmp.lt.s32.totalorder %s4581_s29, 2 }
  0xb7   : > { %s5634_s18 = scalar_select %p4886_p6, 1, 0 }
  0xb8   : > { %s5635_s20 = scalar_select %p4893_p7, 1, 0 }
  0xb9   : > { %s4899_s22 = scalar_select %p59_p2, %s4569_s26, %s61_s1  }
  0xba   : > { %p4901_p5 = por %p426_p4, %p74_p11  ;;  %s562_s19 = sand.u32 1, %s4569_s26  }
  0xbb   : > { %s4906_s21 = sshll.u32 %s562_s19, 2  ;;  %s3740_s4 = sshll.u32 %s4577_s28, 6 }
  0xbc   : > { %s5636_s13 = scalar_select %p4901_p5, 1, 0 }
  0xbd   : > { %s5637_s15 = sld [smem:[#allocation31_spill]]  ;;  %s566_s12 = scalar_lea.vmem [#allocation6], %s4906_s21 }
  0xbe   : > { %s573_s1 = sshll.u32 %s566_s12, 4  ;;  %p4919_p10 = pnand %p4112_p9, %p4880_p12  ;;  %s4915_s1 = int_to_ptr.vmem [resolvable:$true] %s573_s1 }
  0xbf   : > { %s5639_s8 = sld [smem:[#allocation32_spill]]  ;;  %s580_s17 = sand.u32 1, %s4581_s29  }
  0xc0   : > { %s563_s9 = scalar_lea.sflag [#allocation7], %s562_s19  ;;  %p4393_p1 = pneg %p4919_p10 }
  0xc3   : > { %s4912_s10 = scalar_lea.hbm %s5637_s15, %s3740_s4  ;;  %s4396_s16 = scalar_lea.hbm %s5637_s15, 128 }
  0xc4   : > { %s4391_s11 = scalar_lea.hbm %s4912_s10, 64  ;;  %p4397_p12 = scmp.lt.u32.totalorder %s4912_s10, %s5637_s15 }
  0xc5   : > { %s4926_s23 = scalar_lea.hbm %s5639_s8, %s3740_s4  ;;  %p4392_p8 = scmp.ne.s32.totalorder %s4912_s10, %s4391_s11 }
  0xc6   : > { %p4398_p13 = scmp.lt.u32.totalorder %s4396_s16, %s4391_s11  ;;  %p4400_p2 = scmp.lt.u32.totalorder %s4391_s11, %s4912_s10 }
  0xc7   : > { %p4394_p3 = pnand %p4393_p1, %p4392_p8 }
  0xc8   : > { %p4399_p0 = por %p4398_p13, %p4397_p12 }
  0xc9   : > { %p4395_p11 = pneg %p4394_p3 }
  0xca   : > { %p4401_p4 = por %p4400_p2, %p4399_p0 }
  0xcc   : > { %p4402_p9 = pnand %p4401_p4, %p4395_p11 }
  0xce   : > { %4405 = shalt.err (!%p4402_p9)
}
  0xcf   : > { %s4406_s7 = scalar_lea.vmem %s4915_s1, 64  ;;  %s4590_s19 = smov [#allocation6]  }
  0xd0   : > { %p4407_p8 = scmp.ne.s32.totalorder %s4915_s1, %s4406_s7  ;;  %s4411_s4 = sshll.u32 %s4590_s19, 4  ;;  %s4412_s4 = int_to_ptr.vmem [resolvable:$false] %s4411_s4 }
  0xd1   : > { %s4413_s28 = scalar_lea.vmem %s4412_s4, 128  ;;  %p4414_p7 = scmp.lt.s32.totalorder %s4915_s1, %s4412_s4 }
  0xd2   : > { %p4409_p3 = pnand %p4407_p8, %p4393_p1  ;;  %p4415_p12 = scmp.lt.s32.totalorder %s4413_s28, %s4406_s7 }
  0xd4   : > { %p4410_p5 = pneg %p4409_p3  ;;  %p4416_p13 = por %p4415_p12, %p4414_p7 }
  0xd6   : > { %p4417_p0 = pnand %p4416_p13, %p4410_p5 }
  0xd8   : > { %4420 = shalt.err (!%p4417_p0)
}
  0xd9   : > { %4096 = dma.hbm_to_vmem [thread:$0]  (!%p4919_p10), %s4912_s10, 64, %s4915_s1, %s563_s9  }
  0xda   : > { %s584_s11 = scalar_lea.vmem [#allocation9], %s4906_s21  ;;  %s581_s14 = scalar_lea.sflag [#allocation10], %s580_s17 }
  0xdb   : > { %s591_s16 = sshll.u32 %s584_s11, 4  ;;  %s4421_s12 = scalar_lea.hbm %s4926_s23, 64  ;;  %s592_s16 = int_to_ptr.vmem [resolvable:$true] %s591_s16 }
  0xdc   : > { %p4422_p7 = scmp.ne.s32.totalorder %s4926_s23, %s4421_s12  ;;  %s4426_s19 = scalar_lea.hbm %s5639_s8, 128 }
  0xdd   : > { %p4427_p2 = scmp.lt.u32.totalorder %s4926_s23, %s5639_s8  ;;  %p4428_p4 = scmp.lt.u32.totalorder %s4426_s19, %s4421_s12 }
  0xde   : > { %p4424_p5 = pnand %p4422_p7, %p4393_p1  ;;  %p4430_p8 = scmp.lt.u32.totalorder %s4421_s12, %s4926_s23 }
  0xdf   : > { %p4429_p9 = por %p4428_p4, %p4427_p2 }
  0xe0   : > { %p4425_p11 = pneg %p4424_p5 }
  0xe1   : > { %p4431_p3 = por %p4430_p8, %p4429_p9 }
  0xe3   : > { %p4432_p12 = pnand %p4431_p3, %p4425_p11 }
  0xe5   : > { %4435 = shalt.err (!%p4432_p12)
}
  0xe6   : > { %s4436_s9 = scalar_lea.vmem %s592_s16, 64  ;;  %s4591_s21 = smov [#allocation9]  }
  0xe7   : > { %p4437_p13 = scmp.ne.s32.totalorder %s592_s16, %s4436_s9  ;;  %s4441_s10 = sshll.u32 %s4591_s21, 4  ;;  %s4442_s10 = int_to_ptr.vmem [resolvable:$false] %s4441_s10 }
  0xe8   : > { %s4443_s1 = scalar_lea.vmem %s4442_s10, 128  ;;  %p4444_p5 = scmp.lt.s32.totalorder %s592_s16, %s4442_s10 }
  0xe9   : > { %p4439_p0 = pnand %p4437_p13, %p4393_p1  ;;  %p4445_p6 = scmp.lt.s32.totalorder %s4443_s1, %s4436_s9 }
  0xeb   : > { %p4440_p7 = pneg %p4439_p0  ;;  %p4446_p2 = por %p4445_p6, %p4444_p5 }
  0xed   : > { %p4447_p4 = pnand %p4446_p2, %p4440_p7 }
  0xef   : > { %4450 = shalt.err (!%p4447_p4)
}
  0xf0   : > { %4099 = dma.hbm_to_vmem [thread:$0]  (!%p4919_p10), %s4926_s23, 64, %s592_s16, %s581_s14  }
  0xf1   : > { %p5640_p11 = scmp.ne.s32.totalorder %s5622_s30, 0 }
  0xf2   : > { %s4979_s17 = sand.u32 (!%p5640_p11), 1, %s4565_s25   ;;  %p5641_p6 = scmp.ne.s32.totalorder (!%p5640_p11), %s5634_s18, 0 }
  0xf3   : > { %600 = sbr.rel (%p5640_p11) target bundleno = 4763 (0x129b), region = 84  ;;  %s3744_s11 = sshll.u32 (!%p5640_p11), %s4979_s17, 2 }
  0xf4   : > { %s603_s12 = scalar_lea.sflag (!%p5640_p11), [#allocation7], %s4979_s17  ;;  %s4983_s6 = scalar_lea.vmem (!%p5640_p11), [#allocation6], %s3744_s11 }
  0xfa   : > { %4532 = dma.done.wait (%p5641_p6), %s603_s12, 64  }
  0xfb   : > { %4534 = vsyncadd (%p5641_p6), %s603_s12, 4294967232  ;;  %s611_s27 = sand.u32 1, %s4730_s0   ;;  %s4990_s23 = scalar_lea.vmem [#allocation9], %s3744_s11 }
  0xfc   : > { %s612_s30 = scalar_lea.sflag [#allocation10], %s611_s27 }
  0xfd   : > { %4536 = dma.done.wait (%p5641_p6), %s612_s30, 64  }
  0xfe   : > { %4538 = vsyncadd (%p5641_p6), %s612_s30, 4294967232  ;;  %p5642_p10 = scmp.eq.s32.totalorder %s4730_s0, 0 }
 0x100   : > { %4540 = dma.done.wait (%p5642_p10), [#allocation10], 256   ;;  %p5643_p1 = pmov %p5642_p10 }
 0x102   : > { %4542 = vsyncadd (%p5643_p1), [#allocation10], 4294967040  ;;  %p5644_p9 = pmov %p5643_p1 }
 0x103   : > { %p5645_p8 = pmov %p5643_p1 }
 0x104   : > { %4544 = dma.done.wait (%p5644_p9), [#allocation13], 512  }
 0x105   : > { %4546 = vsyncadd (%p5645_p8), [#allocation13], 4294966784  ;;  %p5646_p3 = pmov %p5643_p1 }
 0x106   : > { %p5647_p12 = pmov %p5643_p1 }
 0x107   : > { %4548 = dma.done.wait (%p5646_p3), [#allocation16], 32  }
 0x108   : > { %4550 = vsyncadd (%p5647_p12), [#allocation16], 4294967264  ;;  %v4592_v0 = vmov 0.0   ;;  %vm4593_vm0 = vmmov 0   ;;  %v4189_v1 = vld [vmem:[%s5572_s3] sm:$0xff]   ;;  %v4190_v2 = vld [vmem:[%s5572_s3 + $0x8] sm:$0xff]   ;;  %v951_v28 = vlaneseq }
 0x109   : > { %3885 = vmatprep.subr.bf16.mxu0 %v4592_v0  ;;  %3889 = vmatprep.mubr.msk.bf16.mxu0 %vm4593_vm0, %v4592_v0  ;;  %v701_v3 = vld [vmem:[%s4983_s6] sm:$0xf]  ;;  %vm727_vm1 = vcmask 261120   ;;  %s5648_s2 = sld [smem:[#allocation33_spill]]  ;;  %v5028_v5 = vld [vmem:[%s5574_s5] ss:$0 sm:$0xff] }
 0x10a   : > { %3893 = vmatprep.subr.bf16.mxu1 %v4592_v0  ;;  %3897 = vmatprep.mubr.msk.bf16.mxu1 %vm4593_vm0, %v4592_v0  ;;  %s4594_s9 = smov 96   ;;  %v5041_v7 = vld [vmem:[%s4983_s6] sm:$0xf]  ;;  %vm772_vm2 = vcmask 257024   ;;  %s4595_s1 = smov 112   ;;  %v4194_v24 = vld [vmem:[#allocation12 + $0x8] sm:$0xff]  }
 0x10b   : > { %3886 = vmatpush3.bf16.msra.mxu0 %v4189_v1  ;;  %724 = vrot.lane.b32.xlu0 %v5028_v5, %s4594_s9  ;;  %s4596_s11 = smov 120   ;;  %v4193_v23 = vld [vmem:[#allocation12] sm:$0xff]   ;;  %s4597_s12 = smov 104   ;;  %v781_v25 = vld [vmem:[%s4990_s23] sm:$0xf]  ;;  %v952_v34 = vshrl.u32 %v951_v28, 7 }
 0x10c   : > { %3887 = vmatprep.subr.bf16.mxu0 %v4592_v0  ;;  %3894 = vmatpush3.bf16.msra.mxu1 %v4193_v23  ;;  %v4598_v26 = vmov 1983009808   ;;  %v4599_v29 = vmov 1934713408   ;;  %vm1407_vm3 = vcmask 64512   ;;  %vm1643_vm4 = vcmask 1043456  }
 0x10d   : > { %3895 = vmatprep.subr.bf16.mxu1 %v4592_v0  ;;  %v949_v27 = vunpack.c.l.s4 %v4598_v26  ;;  %v966_v30 = vunpack.c.l.s4 %v4599_v29  ;;  %s5649_s30 = sld [smem:[#allocation34_spill]]  ;;  %s4601_s16 = smov 8   ;;  %vm1996_vm5 = vcmask 130048   ;;  %vm1999_vm6 = vcmask 195584  }
 0x10e   : > { %s4602_s0 = smov 16   ;;  %s4603_s14 = smov 24   ;;  %vm2866_vm9 = vcmask 60416   ;;  %vm3429_vm12 = vcmask 523264  }
 0x10f   : > { %v4191_v4 = vld [vmem:[%s5648_s2] sm:$0xff]   ;;  %3888 = vmatpush3.bf16.msra.mxu0 %v4190_v2  ;;  %v4192_v6 = vld [vmem:[%s5648_s2 + $0x8] sm:$0xff]   ;;  %v950_v33 = vunpack.c.0.s8 %v949_v27  ;;  %v967_v38 = vunpack.c.0.s8 %v966_v30  ;;  %s4604_s7 = smov 32   ;;  %s5650_s28 = sld [smem:[#allocation43_spill]] }
 0x110   : > { %3901 = vmatprep.subr.bf16.mxu0 %v4592_v0  ;;  %3896 = vmatpush3.bf16.msra.mxu1 %v4194_v24  ;;  %s5652_s27 = sld [smem:[#allocation44_spill]]  ;;  %s5654_s18 = sld [smem:[#allocation39_spill]] }
 0x111   : > { %3909 = vmatprep.subr.bf16.mxu1 %v4592_v0  ;;  %v5065_v43 = vsub.s32 %v950_v33, %v952_v34  ;;  %v5068_v47 = vsub.s32 %v967_v38, %v952_v34  ;;  %s5655_s19 = sld [smem:[#allocation41_spill]]  ;;  %s5656_s4 = sld [smem:[#allocation42_spill]] }
 0x112   : > { %3890 = vmatmul.mubr.msk.bf16.vlgmr.msra.gmra.mrb[0].mxu0 %vm727_vm1, %v701_v3  ;;  %p5659_p0 = scmp.ne.s32.totalorder %s5635_s20, 0 }
 0x113   : > { %3902 = vmatpush3.bf16.msra.mxu0 %v4191_v4  ;;  %3905 = vmatprep.mubr.msk.bf16.mxu0 %vm4593_vm0, %v4592_v0 }
 0x114   : > { %3903 = vmatprep.subr.bf16.mxu0 %v4592_v0  ;;  %3898 = vmatmul.mubr.msk.bf16.vlgmr.msra.gmra.mrb[0].mxu1 %vm727_vm1, %v781_v25 }
 0x115   : > { %3911 = vmatprep.mubr.msk.bf16.mxu1 %vm4593_vm0, %v4592_v0  ;;  %s5651_s21 = smov %s5650_s28 }
 0x116   : > { %s5653_s23 = smov %s5652_s27 }
 0x117   : > { %3904 = vmatpush3.bf16.msra.mxu0 %v4192_v6 }
 0x118   : > { %3915 = vmatprep.subr.bf16.mxu0 %v4592_v0 }
 0x11a   : > { %3906 = vmatmul.mubr.msk.bf16.vlgmr.msra.gmra.mrb[4].mxu0 %vm727_vm1, %v5041_v7 }
 0x11b   : > { %3917 = vmatprep.mubr.msk.bf16.mxu0 %vm4593_vm0, %v4592_v0 }
 0x17d   : > { %v725_v8 = vpop.permute.xlu0 %724 }
 0x1e5   : > { %v765_v9 = vpop.f32.mrb[0].mxu0 }
 0x1e6   : > { %v766_v10 = vadd.f32 %v765_v9, %v725_v8  ;;  %v3891_v11 = vpop.f32.mrb[1].mxu0 }
 0x1e7   : > { %v768_v12 = vpop.f32.mrb[2].mxu0 }
 0x1e8   : > { %v5048_v13 = vpack.c.bf16 %v766_v10, %v766_v10  ;;  %v3892_v14 = vpop.f32.mrb[3].mxu0 }
 0x1ea   : > { %773 = vst.msk [vmem:[#allocation2] sm:$0xf] %vm772_vm2, %v5048_v13 }
 0x1ed   : > { %v933_v15 = vpop.f32.mrb[4].mxu0 }
 0x1ee   : > { %v934_v16 = vadd.f32 %v5028_v5, %v933_v15  ;;  %v3907_v17 = vpop.f32.mrb[5].mxu0 }
 0x1ef   : > { %v936_v18 = vpop.f32.mrb[6].mxu0 }
 0x1f0   : > { %v939_v19 = vmul.f32 0.35355338, %v934_v16  ;;  %v3908_v20 = vpop.f32.mrb[7].mxu0 }
 0x1f1   : > { %v866_v21 = vld [vmem:[#allocation2] sm:$0xf]  ;;  %v4600_v20 = vmov 0  }
 0x1f2   : > { %v940_v22 = vpack.c.bf16 %v939_v19, %v939_v19  ;;  %1112 = vrot.lane.b32.xlu1 %v866_v21, %s4595_s1  ;;  %1110 = vrot.lane.b32.xlu0 %v866_v21, %s4596_s11  ;;  %v1119_v36 = vshrl.u32 %v866_v21, 16 }
 0x1f4   : > { %v954_v58 = vrot.slane %v940_v22, %v5065_v43 }
 0x1f6   : > { %1114 = vrot.lane.b32.xlu1 %v866_v21, %s4597_s12  ;;  %942 = vrot.lane.b32.xlu0 %v940_v22, %s4596_s11 }
 0x1fa   : > { %944 = vrot.lane.b32.xlu1 %v940_v22, %s4595_s1  ;;  %946 = vrot.lane.b32.xlu0 %v940_v22, %s4597_s12 }
 0x264   : > { %v1113_v31 = vpop.permute.xlu1 %1112  ;;  %v1111_v32 = vpop.permute.xlu0 %1110 }
 0x265   : > { %v1120_v35 = vshrl.u32 %v1111_v32, 16  ;;  %v1118_v37 = vpack.i.b16 %v1111_v32, %v866_v21  ;;  %v1125_v42 = vshrl.u32 %v1113_v31, 16 }
 0x267   : > { %v1121_v39 = vpack.i.b16 %v1120_v35, %v1119_v36  ;;  %v1135_v46 = vrot.slane %v1118_v37, %v5065_v43 }
 0x268   : > { %v1115_v40 = vpop.permute.xlu1 %1114  ;;  %v943_v41 = vpop.permute.xlu0 %942 }
 0x269   : > { %v1124_v44 = vpack.i.b16 %v1115_v40, %v1113_v31  ;;  %v1126_v45 = vshrl.u32 %v1115_v40, 16  ;;  %v1169_v50 = vrot.slane %v1121_v39, %v5065_v43  ;;  %v988_v57 = vrot.slane %v943_v41, %v5065_v43 }
 0x26b   : > { %v1127_v48 = vpack.i.b16 %v1126_v45, %v1125_v42  ;;  %v1143_v49 = vrot.slane %v1124_v44, %v5065_v43 }
 0x26c   : > { %v945_v51 = vpop.permute.xlu1 %944  ;;  %v947_v52 = vpop.permute.xlu0 %946 }
 0x26d   : > { %v1144_v53 = vcombine.low %v1135_v46, %v1143_v49  ;;  %v1145_v54 = vcombine.high %v1135_v46, %v1143_v49  ;;  %v1177_v55 = vrot.slane %v1127_v48, %v5065_v43  ;;  %v962_v56 = vrot.slane %v945_v51, %v5065_v43 }
 0x26e   : > { %v996_v59 = vrot.slane %v947_v52, %v5065_v43 }
 0x26f   : > { %v1152_v60 = vrot.slane %v1144_v53, %v5068_v47  ;;  %v1159_v61 = vrot.slane %v1145_v54, %v5068_v47  ;;  %v1178_v62 = vcombine.low %v1169_v50, %v1177_v55  ;;  %v1179_v63 = vcombine.high %v1169_v50, %v1177_v55 }
 0x270   : > { %v963_v1 = vcombine.low %v954_v58, %v962_v56  ;;  %v964_v2 = vcombine.high %v954_v58, %v962_v56  ;;  %v997_v3 = vcombine.low %v988_v57, %v996_v59  ;;  %v998_v4 = vcombine.high %v988_v57, %v996_v59 }
 0x271   : > { %v1186_v6 = vrot.slane %v1178_v62, %v5068_v47  ;;  %v1193_v8 = vrot.slane %v1179_v63, %v5068_v47  ;;  %v1196_v9 = vcombine.low %v1152_v60, %v1159_v61  ;;  %v3767_v10 = vcombine.high %v1152_v60, %v1159_v61 }
 0x272   : > { %v971_v11 = vrot.slane %v963_v1, %v5068_v47  ;;  %v978_v12 = vrot.slane %v964_v2, %v5068_v47  ;;  %v1005_v14 = vrot.slane %v997_v3, %v5068_v47  ;;  %v1012_v15 = vrot.slane %v998_v4, %v5068_v47 }
 0x273   : > { %v1203_v16 = vrot.slane %v1196_v9, %v5065_v43  ;;  %v1211_v17 = vrot.slane %v3767_v10, %v5065_v43  ;;  %v1221_v18 = vcombine.low %v1186_v6, %v1193_v8  ;;  %v3768_v19 = vcombine.high %v1186_v6, %v1193_v8 }
 0x274   : > { %v979_v21 = vcombine.high %v971_v11, %v4600_v20  ;;  %v980_v22 = vcombine.high %v978_v12, %v4600_v20  ;;  %v1019_v23 = vshrl.u32 %v971_v11, 16  ;;  %v1035_v24 = vshrl.u32 %v978_v12, 16 }
 0x275   : > { %v1228_v25 = vrot.slane %v1221_v18, %v5065_v43  ;;  %v1236_v26 = vrot.slane %v3768_v19, %v5065_v43  ;;  %v1013_v27 = vcombine.high %v1005_v14, %v4600_v20  ;;  %v1014_v28 = vcombine.high %v1012_v15, %v4600_v20 }
 0x276   : > { %v1027_v29 = vshrl.u32 %v979_v21, 16  ;;  %v1043_v30 = vshrl.u32 %v980_v22, 16  ;;  %v1017_v31 = vpack.i.b16 %v1005_v14, %v971_v11  ;;  %v1020_v32 = vshrl.u32 %v1005_v14, 16 }
 0x277   : > { %v1025_v33 = vpack.i.b16 %v1013_v27, %v979_v21  ;;  %v1028_v34 = vshrl.u32 %v1013_v27, 16  ;;  %v1033_v35 = vpack.i.b16 %v1012_v15, %v978_v12  ;;  %v1036_v36 = vshrl.u32 %v1012_v15, 16 }
 0x278   : > { %v1021_v37 = vpack.i.b16 %v1020_v32, %v1019_v23  ;;  %v1041_v38 = vpack.i.b16 %v1014_v28, %v980_v22  ;;  %v1044_v39 = vshrl.u32 %v1014_v28, 16  ;;  %v1212_v40 = vcombine.low %v1203_v16, %v1211_v17 }
 0x279   : > { %v1029_v41 = vpack.i.b16 %v1028_v34, %v1027_v29  ;;  %v1037_v42 = vpack.i.b16 %v1036_v36, %v1035_v24  ;;  %v1047_v44 = vcombine.low %v1017_v31, %v1033_v35  ;;  %v1237_v45 = vcombine.low %v1228_v25, %v1236_v26  ;;  %v5125_v26 = vpop.f32.mrb[0].mxu1 }
 0x27a   : > { %v1045_v46 = vpack.i.b16 %v1044_v39, %v1043_v30  ;;  %v1055_v48 = vcombine.low %v1025_v33, %v1041_v38  ;;  %v1219_v49 = vrot.slane %v1212_v40, %v5068_v47  ;;  %v3899_v27 = vpop.f32.mrb[1].mxu1 }
 0x27b   : > { %v1072_v50 = vcombine.low %v1021_v37, %v1037_v42  ;;  %v1244_v51 = vrot.slane %v1237_v45, %v5068_v47  ;;  %v1054_v52 = vrot.slane %v1047_v44, %v5065_v43  ;;  %v847_v28 = vpop.f32.mrb[2].mxu1 }
 0x27c   : > { %v1062_v53 = vrot.slane %v1055_v48, %v5065_v43  ;;  %v1080_v54 = vcombine.low %v1029_v41, %v1045_v46  ;;  %v1249_v56 = vshrl.u32 %v1219_v49, 16  ;;  %v1220_v1 = vcombine.high %v1219_v49, %v4600_v20  ;;  %v3900_v29 = vpop.f32.mrb[3].mxu1 }
 0x27d   : > { %v1248_v55 = vpack.i.b16 %v1244_v51, %v1219_v49  ;;  %v1250_v57 = vshrl.u32 %v1244_v51, 16  ;;  %v1245_v58 = vcombine.high %v1244_v51, %v4600_v20  ;;  %v1079_v60 = vrot.slane %v1072_v50, %v5065_v43 }
 0x27e   : > { %v1063_v59 = vcombine.low %v1054_v52, %v1062_v53  ;;  %v1087_v61 = vrot.slane %v1080_v54, %v5065_v43  ;;  %v1255_v10 = vshrl.u32 %v1220_v1, 16 }
 0x27f   : > { %v1412_v62 = vsel %vm1407_vm3, %v1248_v55, 0  ;;  %v1251_v63 = vpack.i.b16 %v1250_v57, %v1249_v56  ;;  %v1256_v6 = vshrl.u32 %v1245_v58, 16  ;;  %v1254_v9 = vpack.i.b16 %v1245_v58, %v1220_v1 }
 0x280   : > { %v1088_v2 = vcombine.low %v1079_v60, %v1087_v61  ;;  %3910 = vmatpush3.bf16.xpose.msra.mxu1 %v1412_v62  ;;  %v1070_v4 = vrot.slane %v1063_v59, %v5068_v47 }
 0x281   : > { %v1458_v3 = vsel %vm1407_vm3, %v1251_v63, 0  ;;  %3921 = vmatprep.subr.bf16.mxu1 %v4592_v0  ;;  %v1257_v15 = vpack.i.b16 %v1256_v6, %v1255_v10  ;;  %v1504_v16 = vsel %vm1407_vm3, %v1254_v9, 0 }
 0x282   : > { %3916 = vmatpush3.bf16.xpose.msra.mxu0 %v1458_v3  ;;  %v1095_v8 = vrot.slane %v1088_v2, %v5068_v47  ;;  %v1100_v14 = vshrl.u32 %v1070_v4, 16  ;;  %v1071_v21 = vcombine.high %v1070_v4, %v4600_v20 }
 0x283   : > { %3927 = vmatprep.subr.bf16.mxu0 %v4592_v0  ;;  %v1550_v19 = vsel %vm1407_vm3, %v1257_v15, 0 }
 0x284   : > { %v1101_v11 = vshrl.u32 %v1095_v8, 16  ;;  %v1099_v12 = vpack.i.b16 %v1095_v8, %v1070_v4  ;;  %v1096_v18 = vcombine.high %v1095_v8, %v4600_v20  ;;  %v1106_v24 = vshrl.u32 %v1071_v21, 16 }
 0x286   : > { %v1102_v17 = vpack.i.b16 %v1101_v11, %v1100_v14  ;;  %v1107_v22 = vshrl.u32 %v1096_v18, 16  ;;  %v1105_v23 = vpack.i.b16 %v1096_v18, %v1071_v21 }
 0x287   : > { %3912 = vmatmul.mubr.msk.bf16.vlgmr.msra.gmra.mrb[4].mxu1 %vm1407_vm3, %v1099_v12 }
 0x288   : > { %3922 = vmatpush3.bf16.xpose.msra.mxu1 %v1504_v16  ;;  %3923 = vmatprep.mubr.msk.bf16.mxu1 %vm4593_vm0, %v4592_v0  ;;  %v1108_v25 = vpack.i.b16 %v1107_v22, %v1106_v24 }
 0x289   : > { %3918 = vmatmul.mubr.msk.bf16.vlgmr.msra.gmra.mrb[8].mxu0 %vm1407_vm3, %v1102_v17  ;;  %3933 = vmatprep.subr.bf16.mxu1 %v4592_v0 }
 0x28a   : > { %3928 = vmatpush3.bf16.xpose.msra.mxu0 %v1550_v19  ;;  %3929 = vmatprep.mubr.msk.bf16.mxu0 %vm4593_vm0, %v4592_v0 }
 0x28b   : > { %3939 = vmatprep.subr.bf16.mxu0 %v4592_v0 }
 0x28f   : > { %3924 = vmatmul.mubr.msk.bf16.vlgmr.msra.gmra.mrb[8].mxu1 %vm1407_vm3, %v1105_v23 }
 0x290   : > { %3935 = vmatprep.mubr.msk.bf16.mxu1 %vm4593_vm0, %v4592_v0 }
 0x291   : > { %3930 = vmatmul.mubr.msk.bf16.vlgmr.msra.gmra.mrb[12].mxu0 %vm1407_vm3, %v1108_v25 }
 0x292   : > { %3941 = vmatprep.mubr.msk.bf16.mxu0 %vm4593_vm0, %v4592_v0 }
 0x35a   : > { %v1448_v30 = vpop.f32.mrb[4].mxu1 }
 0x35b   : > { %v3913_v31 = vpop.f32.mrb[5].mxu1  ;;  %v1592_v32 = vsel %vm1407_vm3, %v1448_v30, -inf }
 0x35c   : > { %1593 = vmax.xlane.f32.xlu1 %v1592_v32  ;;  %v1451_v33 = vpop.f32.mrb[6].mxu1  ;;  %v1494_v34 = vpop.f32.mrb[8].mxu0 }
 0x35d   : > { %v3914_v35 = vpop.f32.mrb[7].mxu1  ;;  %v3919_v36 = vpop.f32.mrb[9].mxu0  ;;  %v1595_v37 = vsel %vm1407_vm3, %v1494_v34, -inf }
 0x35e   : > { %1596 = vmax.xlane.f32.xlu0 %v1595_v37  ;;  %v1497_v38 = vpop.f32.mrb[10].mxu0 }
 0x35f   : > { %v3920_v39 = vpop.f32.mrb[11].mxu0 }
 0x362   : > { %v1540_v40 = vpop.f32.mrb[8].mxu1 }
 0x363   : > { %v3925_v41 = vpop.f32.mrb[9].mxu1  ;;  %v1598_v42 = vsel %vm1407_vm3, %v1540_v40, -inf }
 0x364   : > { %v1543_v44 = vpop.f32.mrb[10].mxu1  ;;  %1599 = vmax.xlane.f32.xlu0 %v1598_v42  ;;  %v1586_v45 = vpop.f32.mrb[12].mxu0 }
 0x365   : > { %v3926_v46 = vpop.f32.mrb[11].mxu1  ;;  %v3931_v48 = vpop.f32.mrb[13].mxu0  ;;  %v1601_v49 = vsel %vm1407_vm3, %v1586_v45, -inf }
 0x366   : > { %1602 = vmax.xlane.f32.xlu1 %v1601_v49  ;;  %v1589_v50 = vpop.f32.mrb[14].mxu0 }
 0x367   : > { %v3932_v51 = vpop.f32.mrb[15].mxu0 }
 0x37a   : > { %777 = vrot.lane.b32.xlu0 %v5048_v13, %s4594_s9 }
 0x3e9   : > { %v1594_v52 = vpop.xlane.xlu1 %1593 }
 0x3ea   : > { %v1604_v53 = vsub.f32 %v1448_v30, %v1594_v52 }
 0x3eb   : > { %v1597_v54 = vpop.xlane.xlu0 %1596 }
 0x3ec   : > { %v1608_v55 = vmul.f32 1.442695, %v1604_v53  ;;  %v1605_v56 = vsub.f32 %v1494_v34, %v1597_v54 }
 0x3ee   : > { %4207 = vpow2.f32 %v1608_v55  ;;  %v1610_v57 = vmul.f32 1.442695, %v1605_v56 }
 0x3f0   : > { %4209 = vpow2.f32 %v1610_v57 }
 0x3f1   : > { %v1600_v58 = vpop.xlane.xlu0 %1599 }
 0x3f2   : > { %v1606_v6 = vsub.f32 %v1540_v40, %v1600_v58 }
 0x3f3   : > { %v1603_v1 = vpop.xlane.xlu1 %1602 }
 0x3f4   : > { %v1607_v2 = vsub.f32 %v1586_v45, %v1603_v1  ;;  %v1612_v9 = vmul.f32 1.442695, %v1606_v6 }
 0x3f5   : > { %v778_v59 = vpop.permute.xlu0 %777 }
 0x3f6   : > { %780 = vst.msk [vmem:[#allocation3] sm:$0xf] %vm772_vm2, %v778_v59  ;;  %v1614_v3 = vmul.f32 1.442695, %v1607_v2 }
 0x3f8   : > { %v5134_v60 = vpop.eup %4207  ;;  %4211 = vpow2.f32 %v1614_v3 }
 0x3f9   : > { %v1616_v61 = vsel %vm1407_vm3, %v5134_v60, 0.0  ;;  %4213 = vpow2.f32 %v1612_v9 }
 0x3fa   : > { %v5138_v62 = vpop.eup %4209  ;;  %1617 = vadd.xlane.f32.xlu1 %v1616_v61 }
 0x3fb   : > { %v1619_v63 = vsel %vm1407_vm3, %v5138_v62, 0.0 }
 0x3fd   : > { %v867_v13 = vld [vmem:[#allocation3] sm:$0xf] }
 0x3fe   : > { %1261 = vrot.lane.b32.xlu0 %v867_v13, %s4595_s1  ;;  %1620 = vadd.xlane.f32.xlu1 %v1619_v63  ;;  %v1268_v23 = vshrl.u32 %v867_v13, 16 }
 0x402   : > { %1263 = vrot.lane.b32.xlu0 %v867_v13, %s4597_s12  ;;  %v5145_v4 = vpop.eup %4211 }
 0x403   : > { %v1625_v8 = vsel %vm1407_vm3, %v5145_v4, 0.0  ;;  %v5149_v10 = vpop.eup %4213 }
 0x404   : > { %v1622_v11 = vsel %vm1407_vm3, %v5149_v10, 0.0 }
 0x40f   : > { %1259 = vrot.lane.b32.xlu1 %v867_v13, %s4596_s11 }
 0x421   : > { %1626 = vadd.xlane.f32.xlu0 %v1625_v8 }
 0x433   : > { %1623 = vadd.xlane.f32.xlu1 %v1622_v11 }
 0x470   : > { %v1262_v12 = vpop.permute.xlu0 %1261 }
 0x471   : > { %v1274_v18 = vshrl.u32 %v1262_v12, 16 }
 0x474   : > { %v1264_v15 = vpop.permute.xlu0 %1263 }
 0x475   : > { %v1275_v16 = vshrl.u32 %v1264_v15, 16  ;;  %v1273_v19 = vpack.i.b16 %v1264_v15, %v1262_v12 }
 0x477   : > { %v1276_v21 = vpack.i.b16 %v1275_v16, %v1274_v18  ;;  %v1292_v27 = vrot.slane %v1273_v19, %v5065_v43 }
 0x479   : > { %v1326_v30 = vrot.slane %v1276_v21, %v5065_v43 }
 0x487   : > { %v1618_v14 = vpop.xlane.xlu1 %1617 }
 0x488   : > { %4215 = vrcp.f32 %v1618_v14 }
 0x48b   : > { %v1621_v17 = vpop.xlane.xlu1 %1620 }
 0x48c   : > { %4217 = vrcp.f32 %v1621_v17 }
 0x48f   : > { %v1260_v22 = vpop.permute.xlu1 %1259 }
 0x490   : > { %v1267_v24 = vpack.i.b16 %v1260_v22, %v867_v13  ;;  %v1269_v25 = vshrl.u32 %v1260_v22, 16 }
 0x492   : > { %v1270_v28 = vpack.i.b16 %v1269_v25, %v1268_v23  ;;  %v1284_v29 = vrot.slane %v1267_v24, %v5065_v43  ;;  %v4216_v51 = vpop.eup %4215 }
 0x493   : > { %v1632_v57 = vmul.f32 %v4216_v51, %v5134_v60 }
 0x494   : > { %v1293_v31 = vcombine.low %v1284_v29, %v1292_v27  ;;  %v1294_v32 = vcombine.high %v1284_v29, %v1292_v27  ;;  %v1318_v33 = vrot.slane %v1270_v28, %v5065_v43 }
 0x495   : > { %v1636_v11 = vpack.c.bf16 %v1632_v57, %v1632_v57 }
 0x496   : > { %v1301_v34 = vrot.slane %v1293_v31, %v5068_v47  ;;  %v1308_v35 = vrot.slane %v1294_v32, %v5068_v47  ;;  %v1327_v36 = vcombine.low %v1318_v33, %v1326_v30  ;;  %v1328_v37 = vcombine.high %v1318_v33, %v1326_v30  ;;  %v4218_v54 = vpop.eup %4217 }
 0x497   : > { %v1633_v63 = vmul.f32 %v4218_v54, %v5138_v62 }
 0x498   : > { %v1335_v38 = vrot.slane %v1327_v36, %v5068_v47  ;;  %v1342_v39 = vrot.slane %v1328_v37, %v5068_v47  ;;  %v1345_v40 = vcombine.low %v1301_v34, %v1308_v35  ;;  %v3769_v41 = vcombine.high %v1301_v34, %v1308_v35 }
 0x499   : > { %v1637_v14 = vpack.c.bf16 %v1633_v63, %v1633_v63 }
 0x49a   : > { %v1352_v42 = vrot.slane %v1345_v40, %v5065_v43  ;;  %v1360_v44 = vrot.slane %v3769_v41, %v5065_v43  ;;  %v1370_v45 = vcombine.low %v1335_v38, %v1342_v39  ;;  %v3770_v46 = vcombine.high %v1335_v38, %v1342_v39 }
 0x49c   : > { %v1377_v48 = vrot.slane %v1370_v45, %v5065_v43  ;;  %v1385_v49 = vrot.slane %v3770_v46, %v5065_v43  ;;  %v1361_v50 = vcombine.low %v1352_v42, %v1360_v44 }
 0x49e   : > { %v1368_v52 = vrot.slane %v1361_v50, %v5068_v47  ;;  %v1386_v53 = vcombine.low %v1377_v48, %v1385_v49 }
 0x4a0   : > { %v1393_v55 = vrot.slane %v1386_v53, %v5068_v47  ;;  %v1369_v56 = vcombine.high %v1368_v52, %v4600_v20  ;;  %v1398_v59 = vshrl.u32 %v1368_v52, 16 }
 0x4a2   : > { %v1397_v58 = vpack.i.b16 %v1393_v55, %v1368_v52  ;;  %v1399_v61 = vshrl.u32 %v1393_v55, 16  ;;  %v1394_v13 = vcombine.high %v1393_v55, %v4600_v20  ;;  %v1404_v1 = vshrl.u32 %v1369_v56, 16 }
 0x4a4   : > { %v1645_v2 = vsel %vm1643_vm4, %v1397_v58, 0  ;;  %v1400_v3 = vpack.i.b16 %v1399_v61, %v1398_v59  ;;  %v1403_v6 = vpack.i.b16 %v1394_v13, %v1369_v56  ;;  %v1405_v8 = vshrl.u32 %v1394_v13, 16 }
 0x4a5   : > { %3934 = vmatpush3.bf16.msra.mxu1 %v1645_v2 }
 0x4a6   : > { %v1691_v9 = vsel %vm1643_vm4, %v1400_v3, 0  ;;  %3945 = vmatprep.subr.bf16.mxu1 %v4592_v0  ;;  %v1406_v60 = vpack.i.b16 %v1405_v8, %v1404_v1  ;;  %v1737_v12 = vsel %vm1643_vm4, %v1403_v6, 0 }
 0x4a7   : > { %3940 = vmatpush3.bf16.msra.mxu0 %v1691_v9 }
 0x4a8   : > { %3936 = vmatmul.mubr.msk.bf16.vlgmr.msra.gmra.mrb[12].mxu1 %vm1407_vm3, %v1636_v11  ;;  %3951 = vmatprep.subr.bf16.mxu0 %v4592_v0  ;;  %v1783_v62 = vsel %vm1643_vm4, %v1406_v60, 0 }
 0x4a9   : > { %3946 = vmatpush3.bf16.msra.mxu1 %v1737_v12  ;;  %3947 = vmatprep.mubr.msk.bf16.mxu1 %vm4593_vm0, %v4592_v0 }
 0x4aa   : > { %3942 = vmatmul.mubr.msk.bf16.vlgmr.msra.gmra.mrb[16].mxu0 %vm1407_vm3, %v1637_v14  ;;  %3957 = vmatprep.subr.bf16.mxu1 %v4592_v0 }
 0x4ab   : > { %3952 = vmatpush3.bf16.msra.mxu0 %v1783_v62  ;;  %3953 = vmatprep.mubr.msk.bf16.mxu0 %vm4593_vm0, %v4592_v0 }
 0x4ac   : > { %3965 = vmatprep.subr.bf16.mxu0 %v4592_v0 }
 0x4ae   : > { %v1627_v15 = vpop.xlane.xlu0 %1626 }
 0x4af   : > { %4219 = vrcp.f32 %v1627_v15 }
 0x4b9   : > { %v4220_v16 = vpop.eup %4219 }
 0x4ba   : > { %v1635_v17 = vmul.f32 %v4220_v16, %v5145_v4  ;;  %v4195_v4 = vld [vmem:[%s5649_s30] sm:$0xff]  }
 0x4bc   : > { %v1639_v18 = vpack.c.bf16 %v1635_v17, %v1635_v17 }
 0x4be   : > { %3954 = vmatmul.mubr.msk.bf16.vlgmr.msra.gmra.mrb[20].mxu0 %vm1407_vm3, %v1639_v18 }
 0x4bf   : > { %3969 = vmatprep.mubr.msk.bf16.mxu0 %vm4593_vm0, %v4592_v0 }
 0x4c0   : > { %v1624_v19 = vpop.xlane.xlu1 %1623 }
 0x4c1   : > { %4221 = vrcp.f32 %v1624_v19 }
 0x4cb   : > { %v4222_v21 = vpop.eup %4221 }
 0x4cc   : > { %v1634_v22 = vmul.f32 %v4222_v21, %v5149_v10 }
 0x4ce   : > { %v1638_v23 = vpack.c.bf16 %v1634_v22, %v1634_v22 }
 0x4d0   : > { %3948 = vmatmul.mubr.msk.bf16.vlgmr.msra.gmra.mrb[16].mxu1 %vm1407_vm3, %v1638_v23 }
 0x4d1   : > { %3961 = vmatprep.mubr.msk.bf16.mxu1 %vm4593_vm0, %v4592_v0  ;;  %3958 = vmatpush3.bf16.msra.mxu1 %v4195_v4 }
 0x4d2   : > { %3959 = vmatprep.subr.bf16.mxu1 %v4592_v0 }
 0x57b   : > { %v1681_v24 = vpop.f32.mrb[12].mxu1 }
 0x57c   : > { %v3937_v25 = vpop.f32.mrb[13].mxu1  ;;  %v1825_v42 = vpack.c.bf16 %v1681_v24, %v1681_v24 }
 0x57d   : > { %v1684_v27 = vpop.f32.mrb[14].mxu1  ;;  %v1727_v28 = vpop.f32.mrb[16].mxu0  ;;  %v4196_v25 = vld [vmem:[%s5649_s30 + $0x8] sm:$0xff]  }
 0x57e   : > { %v3938_v29 = vpop.f32.mrb[15].mxu1  ;;  %v3943_v30 = vpop.f32.mrb[17].mxu0  ;;  %v1859_v32 = vpack.c.bf16 %v1727_v28, %v1727_v28  ;;  %v1832_v50 = vrot.slane %v1825_v42, %v5065_v43  ;;  %3960 = vmatpush3.bf16.msra.mxu1 %v4196_v25 }
 0x57f   : > { %v1730_v10 = vpop.f32.mrb[18].mxu0  ;;  %3973 = vmatprep.subr.bf16.mxu1 %v4592_v0 }
 0x580   : > { %v3944_v31 = vpop.f32.mrb[19].mxu0  ;;  %v1866_v37 = vrot.slane %v1859_v32, %v5065_v43 }
 0x591   : > { %v1819_v33 = vpop.f32.mrb[20].mxu0 }
 0x592   : > { %v1867_v34 = vpack.c.bf16 %v1819_v33, %v1819_v33  ;;  %v3955_v35 = vpop.f32.mrb[21].mxu0 }
 0x593   : > { %v1822_v36 = vpop.f32.mrb[22].mxu0 }
 0x594   : > { %v1874_v38 = vrot.slane %v1867_v34, %v5065_v43  ;;  %v3956_v39 = vpop.f32.mrb[23].mxu0 }
 0x596   : > { %v1875_v40 = vcombine.low %v1866_v37, %v1874_v38  ;;  %v1876_v41 = vcombine.high %v1866_v37, %v1874_v38 }
 0x598   : > { %v1883_v48 = vrot.slane %v1875_v40, %v5068_v47  ;;  %v1890_v53 = vrot.slane %v1876_v41, %v5068_v47 }
 0x59a   : > { %v1891_v56 = vcombine.high %v1883_v48, %v4600_v20  ;;  %v1892_v59 = vcombine.high %v1890_v53, %v4600_v20  ;;  %v1898_v61 = vshrl.u32 %v1883_v48, 16  ;;  %v1914_v6 = vshrl.u32 %v1890_v53, 16 }
 0x59c   : > { %v1906_v3 = vshrl.u32 %v1891_v56, 16  ;;  %v1922_v62 = vshrl.u32 %v1892_v59, 16 }
 0x5a3   : > { %v1773_v44 = vpop.f32.mrb[16].mxu1 }
 0x5a4   : > { %v1833_v45 = vpack.c.bf16 %v1773_v44, %v1773_v44  ;;  %v3949_v46 = vpop.f32.mrb[17].mxu1 }
 0x5a5   : > { %v1776_v49 = vpop.f32.mrb[18].mxu1 }
 0x5a6   : > { %v1840_v51 = vrot.slane %v1833_v45, %v5065_v43  ;;  %v3950_v52 = vpop.f32.mrb[19].mxu1 }
 0x5a8   : > { %v1841_v54 = vcombine.low %v1832_v50, %v1840_v51  ;;  %v1842_v55 = vcombine.high %v1832_v50, %v1840_v51  ;;  %v865_v51 = vunpack.c.l.bf16 %v5041_v7  ;;  %v4197_v7 = vld [vmem:[#allocation11] sm:$0xff]  }
 0x5a9   : > { %3966 = vmatpush3.bf16.msra.mxu0 %v4197_v7 }
 0x5aa   : > { %v1849_v57 = vrot.slane %v1841_v54, %v5068_v47  ;;  %v1856_v58 = vrot.slane %v1842_v55, %v5068_v47  ;;  %3967 = vmatprep.subr.bf16.mxu0 %v4592_v0 }
 0x5ac   : > { %v1857_v13 = vcombine.high %v1849_v57, %v4600_v20  ;;  %v1858_v63 = vcombine.high %v1856_v58, %v4600_v20  ;;  %v1895_v1 = vpack.i.b16 %v1883_v48, %v1849_v57  ;;  %v1897_v2 = vshrl.u32 %v1849_v57, 16 }
 0x5ad   : > { %v1911_v8 = vpack.i.b16 %v1890_v53, %v1856_v58  ;;  %v1913_v9 = vshrl.u32 %v1856_v58, 16 }
 0x5ae   : > { %v1899_v11 = vpack.i.b16 %v1898_v61, %v1897_v2  ;;  %v1903_v60 = vpack.i.b16 %v1891_v56, %v1857_v13  ;;  %v1905_v12 = vshrl.u32 %v1857_v13, 16  ;;  %v1919_v14 = vpack.i.b16 %v1892_v59, %v1858_v63  ;;  %v4198_v2 = vld [vmem:[#allocation11 + $0x8] sm:$0xff]  }
 0x5af   : > { %v1915_v15 = vpack.i.b16 %v1914_v6, %v1913_v9  ;;  %v1921_v16 = vshrl.u32 %v1858_v63, 16  ;;  %v1925_v17 = vcombine.low %v1895_v1, %v1911_v8  ;;  %v5235_v1 = vld [vmem:[#allocation15] ss:$0 sm:$0xff]  ;;  %3968 = vmatpush3.bf16.msra.mxu0 %v4198_v2 }
 0x5b0   : > { %v1907_v18 = vpack.i.b16 %v1906_v3, %v1905_v12  ;;  %v1933_v19 = vcombine.low %v1903_v60, %v1919_v14  ;;  %3979 = vmatprep.subr.bf16.mxu0 %v4592_v0 }
 0x5b1   : > { %v1923_v21 = vpack.i.b16 %v1922_v62, %v1921_v16  ;;  %v1950_v22 = vcombine.low %v1899_v11, %v1915_v15  ;;  %v1932_v23 = vrot.slane %v1925_v17, %v5065_v43 }
 0x5b2   : > { %v1940_v4 = vrot.slane %v1933_v19, %v5065_v43 }
 0x5b3   : > { %v1958_v24 = vcombine.low %v1907_v18, %v1923_v21  ;;  %v1957_v28 = vrot.slane %v1950_v22, %v5065_v43  ;;  %v3782_v18 = vld [vmem:[%s5650_s28] ss:$0 sm:$0xff]  ;;  %s5657_s28 = sld [smem:[#allocation28_spill]] }
 0x5b4   : > { %v1941_v27 = vcombine.low %v1932_v23, %v1940_v4  ;;  %v3783_v21 = vld [vmem:[%s5652_s27] ss:$0 sm:$0xff] }
 0x5b5   : > { %v1965_v29 = vrot.slane %v1958_v24, %v5065_v43 }
 0x5b6   : > { %v1948_v30 = vrot.slane %v1941_v27, %v5068_v47 }
 0x5b7   : > { %v1966_v10 = vcombine.low %v1957_v28, %v1965_v29 }
 0x5b8   : > { %v1949_v32 = vcombine.high %v1948_v30, %v4600_v20  ;;  %v1978_v33 = vshrl.u32 %v1948_v30, 16 }
 0x5b9   : > { %v1973_v31 = vrot.slane %v1966_v10, %v5068_v47  ;;  %s3826_s10 = sshll.u32 %s5657_s28, 8 }
 0x5ba   : > { %v1984_v39 = vshrl.u32 %v1949_v32, 16 }
 0x5bb   : > { %v1979_v34 = vshrl.u32 %v1973_v31, 16  ;;  %v1974_v35 = vcombine.high %v1973_v31, %v4600_v20  ;;  %v1977_v36 = vpack.i.b16 %v1973_v31, %v1948_v30 }
 0x5bd   : > { %v1980_v37 = vpack.i.b16 %v1979_v34, %v1978_v33  ;;  %v1983_v38 = vpack.i.b16 %v1974_v35, %v1949_v32  ;;  %v1985_v40 = vshrl.u32 %v1974_v35, 16 }
 0x5bf   : > { %1987 = vrot.lane.b32.xlu0 %v1980_v37, %s4601_s16  ;;  %1989 = vrot.lane.b32.xlu1 %v1983_v38, %s4602_s0  ;;  %v1986_v41 = vpack.i.b16 %v1985_v40, %v1984_v39 }
 0x5c3   : > { %1991 = vrot.lane.b32.xlu1 %v1986_v41, %s4603_s14  ;;  %2014 = vrot.lane.b32.xlu0 %v5028_v5, %s4604_s7 }
 0x631   : > { %v1988_v42 = vpop.permute.xlu0 %1987  ;;  %v1990_v44 = vpop.permute.xlu1 %1989 }
 0x632   : > { %v1995_v45 = vsel %vm1407_vm3, %v1977_v36, %v1988_v42 }
 0x633   : > { %v1998_v46 = vsel %vm1996_vm5, %v1995_v45, %v1990_v44 }
 0x635   : > { %v1992_v48 = vpop.permute.xlu1 %1991  ;;  %v2015_v50 = vpop.permute.xlu0 %2014 }
 0x636   : > { %v2001_v49 = vsel %vm1999_vm6, %v1998_v46, %v1992_v48 }
 0x637   : > { %3962 = vmatmul.mubr.msk.bf16.vlgmr.msra.gmra.mrb[20].mxu1 %vm727_vm1, %v2001_v49 }
 0x638   : > { %3975 = vmatprep.mubr.msk.bf16.mxu1 %vm4593_vm0, %v4592_v0 }
 0x70a   : > { %v2053_v5 = vpop.f32.mrb[20].mxu1 }
 0x70b   : > { %v2054_v52 = vadd.f32 %v2053_v5, %v2015_v50  ;;  %v3963_v53 = vpop.f32.mrb[21].mxu1 }
 0x70c   : > { %v2056_v54 = vpop.f32.mrb[22].mxu1 }
 0x70d   : > { %v3964_v55 = vpop.f32.mrb[23].mxu1  ;;  %v2059_v56 = vadd.f32 %v2054_v52, %v865_v51 }
 0x70f   : > { %v2062_v57 = vsel %vm727_vm1, %v2059_v56, 0.0 }
 0x710   : > { %2063 = vadd.xlane.f32.xlu1 %v2062_v57 }
 0x79d   : > { %v2064_v58 = vpop.xlane.xlu1 %2063 }
 0x79e   : > { %v2065_v59 = vmul.f32 0.03125, %v2064_v58 }
 0x7a0   : > { %v2066_v61 = vsub.f32 %v2059_v56, %v2065_v59 }
 0x7a2   : > { %v2067_v13 = vmul.f32 %v2066_v61, %v2066_v61 }
 0x7a4   : > { %v2068_v63 = vsel %vm727_vm1, %v2067_v13, 0.0 }
 0x7a5   : > { %2069 = vadd.xlane.f32.xlu0 %v2068_v63 }
 0x7bb   : > { %804 = vrot.lane.b32.xlu0 %v5235_v1, %s4594_s9 }
 0x832   : > { %v2070_v3 = vpop.xlane.xlu0 %2069 }
 0x833   : > { %v2071_v6 = vmul.f32 0.032258064, %v2070_v3 }
 0x835   : > { %4223 = vrsqrt.f32 %v2071_v6  ;;  %vm2074_vm7 = vcmp.eq.f32.partialorder %v2071_v6, inf  ;;  %v2077_v14 = vand.u32 2147483648, %v2071_v6  ;;  %vm2076_vm8 = vcmp.eq.f32.partialorder %v2071_v6, 0.0 }
 0x836   : > { %v805_v8 = vpop.permute.xlu0 %804 }
 0x837   : > { %v845_v9 = vadd.f32 %v5125_v26, %v805_v8 }
 0x839   : > { %v5242_v11 = vpack.c.bf16 %v845_v9, %v845_v9 }
 0x83b   : > { %851 = vst.msk [vmem:[#allocation4] sm:$0xf] %vm772_vm2, %v5242_v11 }
 0x83f   : > { %v4224_v60 = vpop.eup %4223 }
 0x840   : > { %v2073_v12 = vmul.f32 %v4224_v60, %v2071_v6 }
 0x842   : > { %v2075_v62 = vsel %vm2074_vm7, %v2071_v6, %v2073_v12  ;;  %v2093_v15 = vld [vmem:[#allocation4] sm:$0xf] }
 0x843   : > { %v2078_v16 = vsel %vm2076_vm8, %v2077_v14, %v2075_v62  ;;  %2341 = vrot.lane.b32.xlu0 %v2093_v15, %s4597_s12  ;;  %2337 = vrot.lane.b32.xlu1 %v2093_v15, %s4596_s11  ;;  %v2346_v29 = vshrl.u32 %v2093_v15, 16 }
 0x844   : > { %v2079_v17 = vadd.f32 1e-12, %v2078_v16 }
 0x846   : > { %4225 = vrcp.f32 %v2079_v17 }
 0x847   : > { %2339 = vrot.lane.b32.xlu1 %v2093_v15, %s4595_s1 }
 0x850   : > { %v4226_v26 = vpop.eup %4225 }
 0x851   : > { %v2082_v19 = vmul.f32 %v4226_v26, %v2066_v61 }
 0x853   : > { %v2087_v22 = vmul.f32 %v3782_v18, %v2082_v19 }
 0x855   : > { %v5255_v23 = vadd.f32 %v3783_v21, %v2087_v22 }
 0x857   : > { %v2104_v4 = vpack.c.bf16 %v5255_v23, %v5255_v23 }
 0x859   : > { %3970 = vmatmul.mubr.msk.bf16.vlgmr.msra.gmra.mrb[24].mxu0 %vm727_vm1, %v2104_v4 }
 0x85a   : > { %3981 = vmatprep.mubr.msk.bf16.mxu0 %vm4593_vm0, %v4592_v0 }
 0x8b5   : > { %v2338_v24 = vpop.permute.xlu1 %2337  ;;  %v2342_v27 = vpop.permute.xlu0 %2341 }
 0x8b6   : > { %v2347_v25 = vshrl.u32 %v2338_v24, 16  ;;  %v2345_v28 = vpack.i.b16 %v2338_v24, %v2093_v15  ;;  %v2353_v10 = vshrl.u32 %v2342_v27, 16 }
 0x8b8   : > { %v2348_v31 = vpack.i.b16 %v2347_v25, %v2346_v29  ;;  %v2362_v34 = vrot.slane %v2345_v28, %v5065_v43 }
 0x8b9   : > { %v2340_v30 = vpop.permute.xlu1 %2339 }
 0x8ba   : > { %v2351_v32 = vpack.i.b16 %v2342_v27, %v2340_v30  ;;  %v2352_v33 = vshrl.u32 %v2340_v30, 16  ;;  %v2396_v37 = vrot.slane %v2348_v31, %v5065_v43 }
 0x8bc   : > { %v2354_v35 = vpack.i.b16 %v2353_v10, %v2352_v33  ;;  %v2370_v36 = vrot.slane %v2351_v32, %v5065_v43 }
 0x8be   : > { %v2371_v38 = vcombine.low %v2362_v34, %v2370_v36  ;;  %v2372_v39 = vcombine.high %v2362_v34, %v2370_v36  ;;  %v2404_v40 = vrot.slane %v2354_v35, %v5065_v43 }
 0x8c0   : > { %v2379_v41 = vrot.slane %v2371_v38, %v5068_v47  ;;  %v2386_v42 = vrot.slane %v2372_v39, %v5068_v47  ;;  %v2405_v44 = vcombine.low %v2396_v37, %v2404_v40  ;;  %v2406_v45 = vcombine.high %v2396_v37, %v2404_v40 }
 0x8c2   : > { %v2413_v46 = vrot.slane %v2405_v44, %v5068_v47  ;;  %v2420_v48 = vrot.slane %v2406_v45, %v5068_v47  ;;  %v2423_v49 = vcombine.low %v2379_v41, %v2386_v42  ;;  %v3788_v50 = vcombine.high %v2379_v41, %v2386_v42 }
 0x8c4   : > { %v2430_v51 = vrot.slane %v2423_v49, %v5065_v43  ;;  %v2438_v5 = vrot.slane %v3788_v50, %v5065_v43  ;;  %v2448_v52 = vcombine.low %v2413_v46, %v2420_v48  ;;  %v3789_v53 = vcombine.high %v2413_v46, %v2420_v48 }
 0x8c6   : > { %v2455_v54 = vrot.slane %v2448_v52, %v5065_v43  ;;  %v2463_v55 = vrot.slane %v3789_v53, %v5065_v43  ;;  %v2439_v56 = vcombine.low %v2430_v51, %v2438_v5 }
 0x8c8   : > { %v2446_v57 = vrot.slane %v2439_v56, %v5068_v47  ;;  %v2464_v58 = vcombine.low %v2455_v54, %v2463_v55 }
 0x8ca   : > { %v2471_v59 = vrot.slane %v2464_v58, %v5068_v47  ;;  %v5277_v61 = vcombine.high %v2446_v57, %v4600_v20  ;;  %v2476_v63 = vshrl.u32 %v2446_v57, 16 }
 0x8cc   : > { %v2475_v13 = vpack.i.b16 %v2471_v59, %v2446_v57  ;;  %v2477_v7 = vshrl.u32 %v2471_v59, 16  ;;  %v5280_v2 = vcombine.high %v2471_v59, %v4600_v20  ;;  %v2482_v3 = vshrl.u32 %v5277_v61, 16 }
 0x8ce   : > { %v2638_v6 = vsel %vm1407_vm3, %v2475_v13, 0  ;;  %v2478_v8 = vpack.i.b16 %v2477_v7, %v2476_v63  ;;  %v2481_v9 = vpack.i.b16 %v5280_v2, %v5277_v61  ;;  %v2483_v60 = vshrl.u32 %v5280_v2, 16 }
 0x8cf   : > { %3974 = vmatpush3.bf16.xpose.msra.mxu1 %v2638_v6 }
 0x8d0   : > { %v2684_v12 = vsel %vm1407_vm3, %v2478_v8, 0  ;;  %3985 = vmatprep.subr.bf16.mxu1 %v4592_v0  ;;  %v5289_v14 = vpack.i.b16 %v2483_v60, %v2482_v3 }
 0x8d1   : > { %3980 = vmatpush3.bf16.xpose.msra.mxu0 %v2684_v12 }
 0x8d2   : > { %3991 = vmatprep.subr.bf16.mxu0 %v4592_v0 }
 0x92c   : > { %v2160_v62 = vpop.f32.mrb[24].mxu0 }
 0x92d   : > { %v2161_v15 = vadd.f32 %v5235_v1, %v2160_v62  ;;  %v3971_v16 = vpop.f32.mrb[25].mxu0 }
 0x92e   : > { %v2163_v17 = vpop.f32.mrb[26].mxu0 }
 0x92f   : > { %v2166_v26 = vmul.f32 0.35355338, %v2161_v15  ;;  %v3972_v18 = vpop.f32.mrb[27].mxu0 }
 0x931   : > { %v2167_v19 = vpack.c.bf16 %v2166_v26, %v2166_v26  ;;  %v2730_v26 = vsel %vm1407_vm3, %v2481_v9, 0 }
 0x933   : > { %2171 = vrot.lane.b32.xlu0 %v2167_v19, %s4595_s1  ;;  %2169 = vrot.lane.b32.xlu1 %v2167_v19, %s4596_s11  ;;  %v2181_v4 = vrot.slane %v2167_v19, %v5065_v43 }
 0x937   : > { %2173 = vrot.lane.b32.xlu1 %v2167_v19, %s4597_s12 }
 0x9a5   : > { %v2172_v21 = vpop.permute.xlu0 %2171  ;;  %v2170_v22 = vpop.permute.xlu1 %2169 }
 0x9a6   : > { %v2189_v24 = vrot.slane %v2172_v21, %v5065_v43  ;;  %v2215_v10 = vrot.slane %v2170_v22, %v5065_v43  ;;  %v2776_v21 = vsel %vm1407_vm3, %v5289_v14, 0 }
 0x9a8   : > { %v2190_v25 = vcombine.low %v2181_v4, %v2189_v24  ;;  %v2191_v27 = vcombine.high %v2181_v4, %v2189_v24 }
 0x9a9   : > { %v2174_v28 = vpop.permute.xlu1 %2173 }
 0x9aa   : > { %v2198_v29 = vrot.slane %v2190_v25, %v5068_v47  ;;  %v2223_v30 = vrot.slane %v2174_v28, %v5065_v43  ;;  %v2205_v31 = vrot.slane %v2191_v27, %v5068_v47 }
 0x9ac   : > { %v2224_v32 = vcombine.low %v2215_v10, %v2223_v30  ;;  %v2225_v33 = vcombine.high %v2215_v10, %v2223_v30  ;;  %v2206_v34 = vcombine.high %v2198_v29, %v4600_v20  ;;  %v2207_v37 = vcombine.high %v2205_v31, %v4600_v20 }
 0x9ad   : > { %v2246_v38 = vshrl.u32 %v2198_v29, 16  ;;  %v2262_v45 = vshrl.u32 %v2205_v31, 16 }
 0x9ae   : > { %v2232_v35 = vrot.slane %v2224_v32, %v5068_v47  ;;  %v2239_v36 = vrot.slane %v2225_v33, %v5068_v47  ;;  %v2254_v44 = vshrl.u32 %v2206_v34, 16  ;;  %v2270_v52 = vshrl.u32 %v2207_v37, 16 }
 0x9b0   : > { %v2240_v39 = vcombine.high %v2232_v35, %v4600_v20  ;;  %v2241_v40 = vcombine.high %v2239_v36, %v4600_v20  ;;  %v2244_v41 = vpack.i.b16 %v2232_v35, %v2198_v29  ;;  %v2247_v42 = vshrl.u32 %v2232_v35, 16 }
 0x9b1   : > { %v2260_v46 = vpack.i.b16 %v2239_v36, %v2205_v31  ;;  %v2263_v48 = vshrl.u32 %v2239_v36, 16 }
 0x9b2   : > { %v2248_v49 = vpack.i.b16 %v2247_v42, %v2246_v38  ;;  %v2252_v50 = vpack.i.b16 %v2240_v39, %v2206_v34  ;;  %v2255_v51 = vshrl.u32 %v2240_v39, 16  ;;  %v2268_v5 = vpack.i.b16 %v2241_v40, %v2207_v37 }
 0x9b3   : > { %v2264_v53 = vpack.i.b16 %v2263_v48, %v2262_v45  ;;  %v2271_v54 = vshrl.u32 %v2241_v40, 16  ;;  %v2274_v55 = vcombine.low %v2244_v41, %v2260_v46 }
 0x9b4   : > { %v2256_v56 = vpack.i.b16 %v2255_v51, %v2254_v44  ;;  %v2282_v57 = vcombine.low %v2252_v50, %v2268_v5 }
 0x9b5   : > { %v2272_v58 = vpack.i.b16 %v2271_v54, %v2270_v52  ;;  %v2299_v59 = vcombine.low %v2248_v49, %v2264_v53  ;;  %v2281_v13 = vrot.slane %v2274_v55, %v5065_v43 }
 0x9b6   : > { %v2289_v63 = vrot.slane %v2282_v57, %v5065_v43 }
 0x9b7   : > { %v2307_v7 = vcombine.low %v2256_v56, %v2272_v58  ;;  %v2306_v6 = vrot.slane %v2299_v59, %v5065_v43 }
 0x9b8   : > { %v2290_v3 = vcombine.low %v2281_v13, %v2289_v63 }
 0x9b9   : > { %v2314_v8 = vrot.slane %v2307_v7, %v5065_v43 }
 0x9ba   : > { %v2297_v12 = vrot.slane %v2290_v3, %v5068_v47 }
 0x9bb   : > { %v2315_v60 = vcombine.low %v2306_v6, %v2314_v8 }
 0x9bc   : > { %v2327_v16 = vshrl.u32 %v2297_v12, 16  ;;  %v2298_v22 = vcombine.high %v2297_v12, %v4600_v20 }
 0x9bd   : > { %v2322_v62 = vrot.slane %v2315_v60, %v5068_v47 }
 0x9be   : > { %v2333_v9 = vshrl.u32 %v2298_v22, 16 }
 0x9bf   : > { %v2326_v15 = vpack.i.b16 %v2322_v62, %v2297_v12  ;;  %v2328_v17 = vshrl.u32 %v2322_v62, 16  ;;  %v2323_v19 = vcombine.high %v2322_v62, %v4600_v20 }
 0x9c1   : > { %3976 = vmatmul.mubr.msk.bf16.vlgmr.msra.gmra.mrb[24].mxu1 %vm1407_vm3, %v2326_v15  ;;  %v2329_v18 = vpack.i.b16 %v2328_v17, %v2327_v16  ;;  %v2334_v61 = vshrl.u32 %v2323_v19, 16  ;;  %v2332_v2 = vpack.i.b16 %v2323_v19, %v2298_v22 }
 0x9c2   : > { %3986 = vmatpush3.bf16.xpose.msra.mxu1 %v2730_v26  ;;  %3987 = vmatprep.mubr.msk.bf16.mxu1 %vm4593_vm0, %v4592_v0 }
 0x9c3   : > { %3982 = vmatmul.mubr.msk.bf16.vlgmr.msra.gmra.mrb[28].mxu0 %vm1407_vm3, %v2329_v18  ;;  %3997 = vmatprep.subr.bf16.mxu1 %v4592_v0  ;;  %v2335_v4 = vpack.i.b16 %v2334_v61, %v2333_v9 }
 0x9c4   : > { %3992 = vmatpush3.bf16.xpose.msra.mxu0 %v2776_v21  ;;  %3993 = vmatprep.mubr.msk.bf16.mxu0 %vm4593_vm0, %v4592_v0 }
 0x9c5   : > { %4003 = vmatprep.subr.bf16.mxu0 %v4592_v0 }
 0x9c9   : > { %3988 = vmatmul.mubr.msk.bf16.vlgmr.msra.gmra.mrb[28].mxu1 %vm1407_vm3, %v2332_v2 }
 0x9ca   : > { %3999 = vmatprep.mubr.msk.bf16.mxu1 %vm4593_vm0, %v4592_v0 }
 0x9cb   : > { %3994 = vmatmul.mubr.msk.bf16.vlgmr.msra.gmra.mrb[32].mxu0 %vm1407_vm3, %v2335_v4 }
 0x9cc   : > { %4005 = vmatprep.mubr.msk.bf16.mxu0 %vm4593_vm0, %v4592_v0 }
 0xa94   : > { %v2674_v14 = vpop.f32.mrb[24].mxu1 }
 0xa95   : > { %v3977_v24 = vpop.f32.mrb[25].mxu1  ;;  %v2818_v25 = vsel %vm1407_vm3, %v2674_v14, -inf }
 0xa96   : > { %2819 = vmax.xlane.f32.xlu0 %v2818_v25  ;;  %v2677_v27 = vpop.f32.mrb[26].mxu1  ;;  %v2720_v28 = vpop.f32.mrb[28].mxu0 }
 0xa97   : > { %v3978_v29 = vpop.f32.mrb[27].mxu1  ;;  %v3983_v30 = vpop.f32.mrb[29].mxu0  ;;  %v2821_v10 = vsel %vm1407_vm3, %v2720_v28, -inf }
 0xa98   : > { %2822 = vmax.xlane.f32.xlu1 %v2821_v10  ;;  %v2723_v31 = vpop.f32.mrb[30].mxu0 }
 0xa99   : > { %v3984_v32 = vpop.f32.mrb[31].mxu0 }
 0xa9c   : > { %v2766_v33 = vpop.f32.mrb[28].mxu1 }
 0xa9d   : > { %v3989_v34 = vpop.f32.mrb[29].mxu1  ;;  %v2824_v35 = vsel %vm1407_vm3, %v2766_v33, -inf }
 0xa9e   : > { %2825 = vmax.xlane.f32.xlu0 %v2824_v35  ;;  %v2769_v36 = vpop.f32.mrb[30].mxu1  ;;  %v2812_v37 = vpop.f32.mrb[32].mxu0 }
 0xa9f   : > { %v3990_v38 = vpop.f32.mrb[31].mxu1  ;;  %v3995_v39 = vpop.f32.mrb[33].mxu0  ;;  %v2827_v42 = vsel %vm1407_vm3, %v2812_v37, -inf }
 0xaa0   : > { %v2815_v40 = vpop.f32.mrb[34].mxu0 }
 0xaa1   : > { %v3996_v41 = vpop.f32.mrb[35].mxu0 }
 0xaa2   : > { %2828 = vmax.xlane.f32.xlu0 %v2827_v42 }
 0xaa9   : > { %855 = vrot.lane.b32.xlu1 %v5242_v11, %s4594_s9  ;;  %s3752_s9 = sshll.u32 %s4979_s17, 4 }
 0xb23   : > { %v2820_v44 = vpop.xlane.xlu0 %2819 }
 0xb24   : > { %v2830_v45 = vsub.f32 %v2674_v14, %v2820_v44 }
 0xb25   : > { %v2823_v46 = vpop.xlane.xlu1 %2822 }
 0xb26   : > { %v2834_v48 = vmul.f32 1.442695, %v2830_v45  ;;  %v2831_v49 = vsub.f32 %v2720_v28, %v2823_v46 }
 0xb28   : > { %4227 = vpow2.f32 %v2834_v48  ;;  %v2836_v50 = vmul.f32 1.442695, %v2831_v49 }
 0xb29   : > { %v856_v51 = vpop.permute.xlu1 %855 }
 0xb2a   : > { %4229 = vpow2.f32 %v2836_v50  ;;  %858 = vst.msk [vmem:[#allocation5] sm:$0xf] %vm772_vm2, %v856_v51 }
 0xb2b   : > { %v2826_v55 = vpop.xlane.xlu0 %2825 }
 0xb2c   : > { %v2832_v56 = vsub.f32 %v2766_v33, %v2826_v55 }
 0xb2e   : > { %v2838_v57 = vmul.f32 1.442695, %v2832_v56 }
 0xb2f   : > { %v2829_v58 = vpop.xlane.xlu0 %2828 }
 0xb30   : > { %4231 = vpow2.f32 %v2838_v57  ;;  %v2833_v13 = vsub.f32 %v2812_v37, %v2829_v58 }
 0xb31   : > { %v2094_v5 = vld [vmem:[#allocation5] sm:$0xf] }
 0xb32   : > { %v4228_v52 = vpop.eup %4227  ;;  %2488 = vrot.lane.b32.xlu1 %v2094_v5, %s4595_s1  ;;  %v2840_v7 = vmul.f32 1.442695, %v2833_v13  ;;  %v2495_v19 = vshrl.u32 %v2094_v5, 16  ;;  %s5363_s1 = scalar_lea.vmem [#allocation19], %s3752_s9 }
 0xb33   : > { %v2842_v53 = vsel %vm1407_vm3, %v4228_v52, 0.0  ;;  %s3542_s6 = sshll.u32 %s5363_s1, 4  ;;  %s5482_s6 = int_to_ptr.vmem [resolvable:$true] %s3542_s6 }
 0xb34   : > { %v4230_v54 = vpop.eup %4229  ;;  %2843 = vadd.xlane.f32.xlu0 %v2842_v53  ;;  %4233 = vpow2.f32 %v2840_v7 }
 0xb35   : > { %v2845_v11 = vsel %vm1407_vm3, %v4230_v54, 0.0 }
 0xb36   : > { %2490 = vrot.lane.b32.xlu1 %v2094_v5, %s4597_s12 }
 0xb38   : > { %2846 = vadd.xlane.f32.xlu0 %v2845_v11 }
 0xb3a   : > { %v5348_v59 = vpop.eup %4231 }
 0xb3b   : > { %v2848_v63 = vsel %vm1407_vm3, %v5348_v59, 0.0 }
 0xb3e   : > { %v5352_v3 = vpop.eup %4233 }
 0xb3f   : > { %v2851_v6 = vsel %vm1407_vm3, %v5352_v3, 0.0 }
 0xb4e   : > { %2486 = vrot.lane.b32.xlu0 %v2094_v5, %s4596_s11  ;;  %s5658_s11 = sld [smem:[#allocation46_spill]] }
 0xb54   : > { %s5480_s12 = scalar_lea.hbm %s5658_s11, %s3826_s10 }
 0xb5a   : > { %2849 = vadd.xlane.f32.xlu1 %v2848_v63 }
 0xb6d   : > { %2852 = vadd.xlane.f32.xlu0 %v2851_v6 }
 0xba4   : > { %v2489_v8 = vpop.permute.xlu1 %2488 }
 0xba5   : > { %v2501_v16 = vshrl.u32 %v2489_v8, 16 }
 0xba8   : > { %v2491_v12 = vpop.permute.xlu1 %2490 }
 0xba9   : > { %v2502_v15 = vshrl.u32 %v2491_v12, 16  ;;  %v2500_v17 = vpack.i.b16 %v2491_v12, %v2489_v8 }
 0xbab   : > { %v2503_v18 = vpack.i.b16 %v2502_v15, %v2501_v16  ;;  %v2519_v2 = vrot.slane %v2500_v17, %v5065_v43 }
 0xbad   : > { %v2553_v24 = vrot.slane %v2503_v18, %v5065_v43 }
 0xbc1   : > { %v2844_v60 = vpop.xlane.xlu0 %2843 }
 0xbc2   : > { %4235 = vrcp.f32 %v2844_v60 }
 0xbc5   : > { %v2847_v62 = vpop.xlane.xlu0 %2846 }
 0xbc6   : > { %4237 = vrcp.f32 %v2847_v62 }
 0xbc9   : > { %v2487_v26 = vpop.permute.xlu0 %2486 }
 0xbca   : > { %v2494_v21 = vpack.i.b16 %v2487_v26, %v2094_v5  ;;  %v2496_v22 = vshrl.u32 %v2487_v26, 16 }
 0xbcc   : > { %v4236_v61 = vpop.eup %4235  ;;  %v2497_v9 = vpack.i.b16 %v2496_v22, %v2495_v19  ;;  %v2511_v4 = vrot.slane %v2494_v21, %v5065_v43 }
 0xbcd   : > { %v2858_v14 = vmul.f32 %v4236_v61, %v4228_v52 }
 0xbce   : > { %v2520_v25 = vcombine.low %v2511_v4, %v2519_v2  ;;  %v2521_v27 = vcombine.high %v2511_v4, %v2519_v2  ;;  %v2545_v28 = vrot.slane %v2497_v9, %v5065_v43 }
 0xbcf   : > { %v2862_v29 = vpack.c.bf16 %v2858_v14, %v2858_v14 }
 0xbd0   : > { %v4238_v30 = vpop.eup %4237  ;;  %v2528_v10 = vrot.slane %v2520_v25, %v5068_v47  ;;  %v2535_v31 = vrot.slane %v2521_v27, %v5068_v47  ;;  %v2554_v32 = vcombine.low %v2545_v28, %v2553_v24  ;;  %v2555_v33 = vcombine.high %v2545_v28, %v2553_v24 }
 0xbd1   : > { %v2859_v34 = vmul.f32 %v4238_v30, %v4230_v54  ;;  %2867 = vst.msk [vmem:[%s5363_s1] sm:$0xf] %vm2866_vm9, %v2862_v29 }
 0xbd2   : > { %v2562_v35 = vrot.slane %v2554_v32, %v5068_v47  ;;  %v2569_v36 = vrot.slane %v2555_v33, %v5068_v47  ;;  %v2572_v37 = vcombine.low %v2528_v10, %v2535_v31  ;;  %v3790_v38 = vcombine.high %v2528_v10, %v2535_v31 }
 0xbd3   : > { %v2863_v39 = vpack.c.bf16 %v2859_v34, %v2859_v34 }
 0xbd4   : > { %v2579_v40 = vrot.slane %v2572_v37, %v5065_v43  ;;  %v2587_v41 = vrot.slane %v3790_v38, %v5065_v43  ;;  %v2597_v42 = vcombine.low %v2562_v35, %v2569_v36  ;;  %v3791_v44 = vcombine.high %v2562_v35, %v2569_v36 }
 0xbd5   : > { %2868 = vst.msk [vmem:[%s5363_s1 + $0x4] sm:$0xf] %vm2866_vm9, %v2863_v39 }
 0xbd6   : > { %v2604_v45 = vrot.slane %v2597_v42, %v5065_v43  ;;  %v2612_v46 = vrot.slane %v3791_v44, %v5065_v43  ;;  %v2588_v48 = vcombine.low %v2579_v40, %v2587_v41 }
 0xbd8   : > { %v2595_v49 = vrot.slane %v2588_v48, %v5068_v47  ;;  %v2613_v50 = vcombine.low %v2604_v45, %v2612_v46 }
 0xbda   : > { %v2620_v51 = vrot.slane %v2613_v50, %v5068_v47  ;;  %v2596_v5 = vcombine.high %v2595_v49, %v4600_v20  ;;  %v2625_v53 = vshrl.u32 %v2595_v49, 16 }
 0xbdc   : > { %v2624_v52 = vpack.i.b16 %v2620_v51, %v2595_v49  ;;  %v2626_v54 = vshrl.u32 %v2620_v51, 16  ;;  %v2621_v11 = vcombine.high %v2620_v51, %v4600_v20  ;;  %v2631_v55 = vshrl.u32 %v2596_v5, 16 }
 0xbde   : > { %v2875_v56 = vsel %vm1643_vm4, %v2624_v52, 0  ;;  %v2627_v57 = vpack.i.b16 %v2626_v54, %v2625_v53  ;;  %v2630_v58 = vpack.i.b16 %v2621_v11, %v2596_v5  ;;  %v2632_v13 = vshrl.u32 %v2621_v11, 16 }
 0xbdf   : > { %3998 = vmatpush3.bf16.msra.mxu1 %v2875_v56 }
 0xbe0   : > { %v2921_v63 = vsel %vm1643_vm4, %v2627_v57, 0  ;;  %4009 = vmatprep.subr.bf16.mxu1 %v4592_v0  ;;  %v2633_v7 = vpack.i.b16 %v2632_v13, %v2631_v55  ;;  %v2967_v6 = vsel %vm1643_vm4, %v2630_v58, 0 }
 0xbe1   : > { %4004 = vmatpush3.bf16.msra.mxu0 %v2921_v63 }
 0xbe2   : > { %4000 = vmatmul.mubr.msk.bf16.vlgmr.msra.gmra.mrb[32].mxu1 %vm1407_vm3, %v2862_v29  ;;  %4015 = vmatprep.subr.bf16.mxu0 %v4592_v0  ;;  %v3013_v8 = vsel %vm1643_vm4, %v2633_v7, 0 }
 0xbe3   : > { %4010 = vmatpush3.bf16.msra.mxu1 %v2967_v6  ;;  %4011 = vmatprep.mubr.msk.bf16.mxu1 %vm4593_vm0, %v4592_v0 }
 0xbe4   : > { %4006 = vmatmul.mubr.msk.bf16.vlgmr.msra.gmra.mrb[36].mxu0 %vm1407_vm3, %v2863_v39  ;;  %4021 = vmatprep.subr.bf16.mxu1 %v4592_v0 }
 0xbe5   : > { %4016 = vmatpush3.bf16.msra.mxu0 %v3013_v8  ;;  %4017 = vmatprep.mubr.msk.bf16.mxu0 %vm4593_vm0, %v4592_v0 }
 0xbe6   : > { %4029 = vmatprep.subr.bf16.mxu0 %v4592_v0 }
 0xbe7   : > { %v2850_v60 = vpop.xlane.xlu1 %2849 }
 0xbe8   : > { %4239 = vrcp.f32 %v2850_v60 }
 0xbf2   : > { %v4240_v12 = vpop.eup %4239 }
 0xbf3   : > { %v2860_v62 = vmul.f32 %v4240_v12, %v5348_v59  ;;  %v4199_v59 = vld [vmem:[#allocation14] sm:$0xff]  }
 0xbf5   : > { %v2864_v15 = vpack.c.bf16 %v2860_v62, %v2860_v62 }
 0xbf7   : > { %2869 = vst.msk [vmem:[%s5363_s1 + $0x8] sm:$0xf] %vm2866_vm9, %v2864_v15  ;;  %4012 = vmatmul.mubr.msk.bf16.vlgmr.msra.gmra.mrb[36].mxu1 %vm1407_vm3, %v2864_v15 }
 0xbf8   : > { %4025 = vmatprep.mubr.msk.bf16.mxu1 %vm4593_vm0, %v4592_v0  ;;  %4022 = vmatpush3.bf16.msra.mxu1 %v4199_v59  ;;  %v4200_v59 = vld [vmem:[#allocation14 + $0x8] sm:$0xff]  }
 0xbf9   : > { %4023 = vmatprep.subr.bf16.mxu1 %v4592_v0 }
 0xbfa   : > { %v2853_v16 = vpop.xlane.xlu0 %2852 }
 0xbfb   : > { %4241 = vrcp.f32 %v2853_v16 }
 0xbfc   : > { %4024 = vmatpush3.bf16.msra.mxu1 %v4200_v59 }
 0xbfd   : > { %4037 = vmatprep.subr.bf16.mxu1 %v4592_v0 }
 0xc05   : > { %v4242_v17 = vpop.eup %4241 }
 0xc06   : > { %v2861_v26 = vmul.f32 %v4242_v17, %v5352_v3 }
 0xc08   : > { %v2865_v18 = vpack.c.bf16 %v2861_v26, %v2861_v26 }
 0xc0a   : > { %2870 = vst.msk [vmem:[%s5363_s1 + $0xc] sm:$0xf] %vm2866_vm9, %v2865_v18  ;;  %4018 = vmatmul.mubr.msk.bf16.vlgmr.msra.gmra.mrb[40].mxu0 %vm1407_vm3, %v2865_v18 }
 0xc0b   : > { %4033 = vmatprep.mubr.msk.bf16.mxu0 %vm4593_vm0, %v4592_v0 }
 0xcb5   : > { %v2911_v19 = vpop.f32.mrb[32].mxu1 }
 0xcb6   : > { %v4001_v21 = vpop.f32.mrb[33].mxu1  ;;  %v3055_v14 = vpack.c.bf16 %v2911_v19, %v2911_v19 }
 0xcb7   : > { %v2914_v22 = vpop.f32.mrb[34].mxu1  ;;  %v2957_v61 = vpop.f32.mrb[36].mxu0 }
 0xcb8   : > { %v4002_v2 = vpop.f32.mrb[35].mxu1  ;;  %v4007_v9 = vpop.f32.mrb[37].mxu0  ;;  %v3062_v29 = vrot.slane %v3055_v14, %v5065_v43  ;;  %v3089_v33 = vpack.c.bf16 %v2957_v61, %v2957_v61 }
 0xcb9   : > { %v2960_v4 = vpop.f32.mrb[38].mxu0 }
 0xcba   : > { %v4008_v3 = vpop.f32.mrb[39].mxu0  ;;  %v3096_v39 = vrot.slane %v3089_v33, %v5065_v43 }
 0xcca   : > { %v3003_v24 = vpop.f32.mrb[36].mxu1 }
 0xccb   : > { %v3063_v25 = vpack.c.bf16 %v3003_v24, %v3003_v24  ;;  %v4013_v27 = vpop.f32.mrb[37].mxu1 }
 0xccc   : > { %v3006_v28 = vpop.f32.mrb[38].mxu1 }
 0xccd   : > { %v3070_v30 = vrot.slane %v3063_v25, %v5065_v43  ;;  %v4014_v10 = vpop.f32.mrb[39].mxu1 }
 0xccf   : > { %v3071_v31 = vcombine.low %v3062_v29, %v3070_v30  ;;  %v3072_v32 = vcombine.high %v3062_v29, %v3070_v30 }
 0xcd1   : > { %v3079_v37 = vrot.slane %v3071_v31, %v5068_v47  ;;  %v3086_v42 = vrot.slane %v3072_v32, %v5068_v47 }
 0xcd3   : > { %v3087_v46 = vcombine.high %v3079_v37, %v4600_v20  ;;  %v3088_v50 = vcombine.high %v3086_v42, %v4600_v20  ;;  %v3127_v51 = vshrl.u32 %v3079_v37, 16  ;;  %v3143_v55 = vshrl.u32 %v3086_v42, 16 }
 0xcd5   : > { %v3135_v11 = vshrl.u32 %v3087_v46, 16  ;;  %v3151_v6 = vshrl.u32 %v3088_v50, 16 }
 0xcdd   : > { %v3049_v34 = vpop.f32.mrb[40].mxu0 }
 0xcde   : > { %v3097_v35 = vpack.c.bf16 %v3049_v34, %v3049_v34  ;;  %v4019_v36 = vpop.f32.mrb[41].mxu0 }
 0xcdf   : > { %v3052_v38 = vpop.f32.mrb[42].mxu0 }
 0xce0   : > { %v3104_v40 = vrot.slane %v3097_v35, %v5065_v43  ;;  %v4020_v41 = vpop.f32.mrb[43].mxu0 }
 0xce2   : > { %v3105_v44 = vcombine.low %v3096_v39, %v3104_v40  ;;  %v3106_v45 = vcombine.high %v3096_v39, %v3104_v40 }
 0xce4   : > { %v3113_v48 = vrot.slane %v3105_v44, %v5068_v47  ;;  %v3120_v49 = vrot.slane %v3106_v45, %v5068_v47 }
 0xce6   : > { %v3121_v5 = vcombine.high %v3113_v48, %v4600_v20  ;;  %v3122_v52 = vcombine.high %v3120_v49, %v4600_v20  ;;  %v3125_v53 = vpack.i.b16 %v3113_v48, %v3079_v37  ;;  %v3128_v54 = vshrl.u32 %v3113_v48, 16 }
 0xce7   : > { %v3141_v56 = vpack.i.b16 %v3120_v49, %v3086_v42  ;;  %v3144_v57 = vshrl.u32 %v3120_v49, 16  ;;  %v4201_v49 = vld [vmem:[%s5654_s18] sm:$0xff]  }
 0xce8   : > { %v3129_v58 = vpack.i.b16 %v3128_v54, %v3127_v51  ;;  %v3133_v13 = vpack.i.b16 %v3121_v5, %v3087_v46  ;;  %v3136_v63 = vshrl.u32 %v3121_v5, 16  ;;  %v3149_v7 = vpack.i.b16 %v3122_v52, %v3088_v50  ;;  %4030 = vmatpush3.bf16.msra.mxu0 %v4201_v49  ;;  %v4202_v50 = vld [vmem:[%s5654_s18 + $0x8] sm:$0xff]  }
 0xce9   : > { %v3145_v8 = vpack.i.b16 %v3144_v57, %v3143_v55  ;;  %v3152_v60 = vshrl.u32 %v3122_v52, 16  ;;  %v3155_v12 = vcombine.low %v3125_v53, %v3141_v56  ;;  %4031 = vmatprep.subr.bf16.mxu0 %v4592_v0  ;;  %v4204_v51 = vld [vmem:[%s5655_s19 + $0x8] sm:$0xff]  }
 0xcea   : > { %v3137_v62 = vpack.i.b16 %v3136_v63, %v3135_v11  ;;  %v3163_v15 = vcombine.low %v3133_v13, %v3149_v7  ;;  %v3803_v13 = vld [vmem:[%s5651_s21 + $0x1] ss:$0 sm:$0xff] }
 0xceb   : > { %v3153_v16 = vpack.i.b16 %v3152_v60, %v3151_v6  ;;  %v3180_v17 = vcombine.low %v3129_v58, %v3145_v8  ;;  %v3162_v26 = vrot.slane %v3155_v12, %v5065_v43  ;;  %v3804_v7 = vld [vmem:[%s5653_s23 + $0x1] ss:$0 sm:$0xff]  ;;  %v4205_v12 = vld [vmem:[%s5655_s19 + $0x10] sm:$0xff]  }
 0xcec   : > { %v3170_v18 = vrot.slane %v3163_v15, %v5065_v43  ;;  %4032 = vmatpush3.bf16.msra.mxu0 %v4202_v50  ;;  %v3805_v15 = vld [vmem:[#allocation17] ss:$0 sm:$0xff] }
 0xced   : > { %v3188_v19 = vcombine.low %v3137_v62, %v3153_v16  ;;  %v3187_v22 = vrot.slane %v3180_v17, %v5065_v43  ;;  %v4206_v62 = vld [vmem:[%s5655_s19 + $0x18] sm:$0xff]  }
 0xcee   : > { %v3171_v21 = vcombine.low %v3162_v26, %v3170_v18 }
 0xcef   : > { %v3195_v61 = vrot.slane %v3188_v19, %v5065_v43 }
 0xcf0   : > { %v3178_v2 = vrot.slane %v3171_v21, %v5068_v47 }
 0xcf1   : > { %v3196_v9 = vcombine.low %v3187_v22, %v3195_v61 }
 0xcf2   : > { %v3179_v3 = vcombine.high %v3178_v2, %v4600_v20  ;;  %v3208_v14 = vshrl.u32 %v3178_v2, 16 }
 0xcf3   : > { %v3203_v4 = vrot.slane %v3196_v9, %v5068_v47 }
 0xcf4   : > { %v3214_v30 = vshrl.u32 %v3179_v3, 16 }
 0xcf5   : > { %v3209_v24 = vshrl.u32 %v3203_v4, 16  ;;  %v3204_v25 = vcombine.high %v3203_v4, %v4600_v20  ;;  %v3207_v27 = vpack.i.b16 %v3203_v4, %v3178_v2 }
 0xcf7   : > { %v3210_v28 = vpack.i.b16 %v3209_v24, %v3208_v14  ;;  %v3213_v29 = vpack.i.b16 %v3204_v25, %v3179_v3  ;;  %v3215_v10 = vshrl.u32 %v3204_v25, 16 }
 0xcf9   : > { %3217 = vrot.lane.b32.xlu1 %v3210_v28, %s4601_s16  ;;  %3219 = vrot.lane.b32.xlu0 %v3213_v29, %s4602_s0  ;;  %v3216_v43 = vpack.i.b16 %v3215_v10, %v3214_v30  ;;  %s3514_s16 = scalar_lea.sflag [#allocation20], %s4979_s17  ;;  %s4451_s0 = scalar_lea.vmem %s5482_s6, 256 }
 0xcfa   : > { %p4452_p13 = scmp.ne.s32.totalorder %s5482_s6, %s4451_s0 }
 0xcfc   : > { %p4453_p7 = pnand %p4452_p13, %p5659_p0 }
 0xcfd   : > { %3221 = vrot.lane.b32.xlu1 %v3216_v43, %s4603_s14  ;;  %s4605_s14 = smov [#allocation19]  }
 0xcfe   : > { %p4454_p5 = pneg %p4453_p7 }
 0xd01   : > { %3242 = vrot.lane.b32.xlu1 %v5235_v1, %s4604_s7  ;;  %s4455_s7 = sshll.u32 %s4605_s14, 4  ;;  %s4456_s7 = int_to_ptr.vmem [resolvable:$false] %s4455_s7 }
 0xd02   : > { %s4457_s1 = scalar_lea.vmem %s4456_s7, 512  ;;  %p4458_p2 = scmp.lt.s32.totalorder %s5482_s6, %s4456_s7 }
 0xd03   : > { %p4459_p4 = scmp.lt.s32.totalorder %s4457_s1, %s4451_s0 }
 0xd05   : > { %p4460_p11 = por %p4459_p4, %p4458_p2 }
 0xd07   : > { %p4461_p6 = pnand %p4460_p11, %p4454_p5 }
 0xd6b   : > { %v3218_v47 = vpop.permute.xlu1 %3217  ;;  %v3220_v32 = vpop.permute.xlu0 %3219 }
 0xd6c   : > { %v3225_v31 = vsel %vm1407_vm3, %v3207_v27, %v3218_v47 }
 0xd6d   : > { %v3227_v20 = vsel %vm1996_vm5, %v3225_v31, %v3220_v32 }
 0xd6f   : > { %v3222_v33 = vpop.permute.xlu1 %3221 }
 0xd70   : > { %v3229_v34 = vsel %vm1999_vm6, %v3227_v20, %v3222_v33 }
 0xd71   : > { %4026 = vmatmul.mubr.msk.bf16.vlgmr.msra.gmra.mrb[40].mxu1 %vm727_vm1, %v3229_v34 }
 0xd72   : > { %4045 = vmatprep.mubr.msk.bf16.mxu1 %vm4593_vm0, %v4592_v0 }
 0xd73   : > { %v3243_v35 = vpop.permute.xlu1 %3242 }
 0xe44   : > { %v3281_v36 = vpop.f32.mrb[40].mxu1 }
 0xe45   : > { %v3282_v37 = vadd.f32 %v3281_v36, %v3243_v35  ;;  %v4027_v38 = vpop.f32.mrb[41].mxu1 }
 0xe46   : > { %v3284_v39 = vpop.f32.mrb[42].mxu1 }
 0xe47   : > { %v4028_v1 = vpop.f32.mrb[43].mxu1  ;;  %v3287_v40 = vadd.f32 %v3282_v37, %v5255_v23  ;;  %v4203_v23 = vld [vmem:[%s5655_s19] sm:$0xff]  }
 0xe48   : > { %4038 = vmatpush3.bf16.msra.mxu1 %v4203_v23 }
 0xe49   : > { %v3290_v41 = vsel %vm727_vm1, %v3287_v40, 0.0  ;;  %4039 = vmatprep.subr.bf16.mxu1 %v4592_v0 }
 0xe4a   : > { %3291 = vadd.xlane.f32.xlu0 %v3290_v41 }
 0xe4c   : > { %4040 = vmatpush3.bf16.msra.mxu1 %v4204_v51 }
 0xe4d   : > { %4041 = vmatprep.subr.bf16.mxu1 %v4592_v0 }
 0xe50   : > { %4042 = vmatpush3.bf16.msra.mxu1 %v4205_v12 }
 0xe51   : > { %4043 = vmatprep.subr.bf16.mxu1 %v4592_v0  ;;  %v3809_v0 = vld [vmem:[%s5656_s4] ss:$0 sm:$0xff] }
 0xe54   : > { %4044 = vmatpush3.bf16.msra.mxu1 %v4206_v62 }
 0xed7   : > { %v3292_v42 = vpop.xlane.xlu0 %3291 }
 0xed8   : > { %v3293_v44 = vmul.f32 0.03125, %v3292_v42 }
 0xeda   : > { %v3294_v45 = vsub.f32 %v3287_v40, %v3293_v44 }
 0xedc   : > { %v3295_v46 = vmul.f32 %v3294_v45, %v3294_v45 }
 0xede   : > { %v3296_v48 = vsel %vm727_vm1, %v3295_v46, 0.0 }
 0xedf   : > { %3297 = vadd.xlane.f32.xlu1 %v3296_v48 }
 0xf6c   : > { %v3298_v5 = vpop.xlane.xlu1 %3297 }
 0xf6d   : > { %v3299_v52 = vmul.f32 0.032258064, %v3298_v5 }
 0xf6f   : > { %4243 = vrsqrt.f32 %v3299_v52  ;;  %vm3302_vm10 = vcmp.eq.f32.partialorder %v3299_v52, inf  ;;  %v3305_v11 = vand.u32 2147483648, %v3299_v52  ;;  %vm3304_vm11 = vcmp.eq.f32.partialorder %v3299_v52, 0.0 }
 0xf79   : > { %v4244_v53 = vpop.eup %4243 }
 0xf7a   : > { %v3301_v54 = vmul.f32 %v4244_v53, %v3299_v52 }
 0xf7c   : > { %v3303_v55 = vsel %vm3302_vm10, %v3299_v52, %v3301_v54 }
 0xf7d   : > { %v3306_v56 = vsel %vm3304_vm11, %v3305_v11, %v3303_v55 }
 0xf7e   : > { %v3307_v57 = vadd.f32 1e-12, %v3306_v56 }
 0xf80   : > { %4245 = vrcp.f32 %v3307_v57 }
 0xf8a   : > { %v4246_v58 = vpop.eup %4245 }
 0xf8b   : > { %v3310_v63 = vmul.f32 %v4246_v58, %v3294_v45 }
 0xf8d   : > { %v3315_v6 = vmul.f32 %v3803_v13, %v3310_v63 }
 0xf8f   : > { %v3320_v8 = vadd.f32 %v3804_v7, %v3315_v6 }
 0xf91   : > { %v3321_v60 = vpack.c.bf16 %v3320_v8, %v3320_v8 }
 0xf93   : > { %4034 = vmatmul.mubr.msk.bf16.vlgmr.msra.gmra.mrb[44].mxu0 %vm727_vm1, %v3321_v60 }
0x1066   : > { %v3382_v16 = vpop.f32.mrb[44].mxu0 }
0x1067   : > { %v3383_v17 = vadd.f32 %v3805_v15, %v3382_v16  ;;  %v4035_v26 = vpop.f32.mrb[45].mxu0 }
0x1068   : > { %v3385_v18 = vpop.f32.mrb[46].mxu0 }
0x1069   : > { %v3388_v59 = vmax.f32 %v3383_v17, 0.0  ;;  %v4036_v19 = vpop.f32.mrb[47].mxu0 }
0x106b   : > { %v3389_v21 = vpack.c.bf16 %v3388_v59, %v3388_v59 }
0x106d   : > { %4046 = vmatmul.mubr.msk.bf16.vlgmr.msra.gmra.mrb[44].mxu1 %vm3429_vm12, %v3389_v21 }
0x1140   : > { %v3467_v22 = vpop.f32.mrb[44].mxu1 }
0x1141   : > { %v3468_v61 = vadd.f32 %v3809_v0, %v3467_v22  ;;  %v4047_v2 = vpop.f32.mrb[45].mxu1 }
0x1142   : > { %v3470_v9 = vpop.f32.mrb[46].mxu1 }
0x1143   : > { %v4048_v4 = vpop.f32.mrb[47].mxu1  ;;  %v3473_v3 = vadd.f32 %v3468_v61, %v3320_v8 }
0x1145   : > { %v3476_v14 = vsel %vm727_vm1, %v3473_v3, 0.0 }
0x1146   : > { %3477 = vadd.xlane.f32.xlu0 %v3476_v14 }
0x11d3   : > { %v3478_v24 = vpop.xlane.xlu0 %3477 }
0x11d4   : > { %v3479_v25 = vmul.f32 0.03125, %v3478_v24 }
0x11d6   : > { %v3480_v27 = vsub.f32 %v3473_v3, %v3479_v25 }
0x11d8   : > { %v3481_v28 = vmul.f32 %v3480_v27, %v3480_v27 }
0x11da   : > { %v3482_v29 = vsel %vm727_vm1, %v3481_v28, 0.0 }
0x11db   : > { %3483 = vadd.xlane.f32.xlu0 %v3482_v29 }
0x11dc   : > { %4464 = shalt.err (!%p4461_p6)
}
0x11dd   : > { %s4465_s4 = scalar_lea.hbm %s5480_s12, 256  ;;  %s4469_s9 = scalar_lea.hbm %s5658_s11, 512 }
0x11de   : > { %p4466_p10 = scmp.ne.s32.totalorder %s5480_s12, %s4465_s4  ;;  %p4470_p8 = scmp.lt.u32.totalorder %s5480_s12, %s5658_s11 }
0x11df   : > { %p4471_p3 = scmp.lt.u32.totalorder %s4469_s9, %s4465_s4  ;;  %p4473_p13 = scmp.lt.u32.totalorder %s4465_s4, %s5480_s12 }
0x11e0   : > { %p4467_p1 = pnand %p4466_p10, %p5659_p0 }
0x11e1   : > { %p4472_p12 = por %p4471_p3, %p4470_p8 }
0x11e2   : > { %p4468_p9 = pneg %p4467_p1 }
0x11e3   : > { %p4474_p7 = por %p4473_p13, %p4472_p12 }
0x11e5   : > { %p4475_p5 = pnand %p4474_p7, %p4468_p9 }
0x11e7   : > { %4478 = shalt.err (!%p4475_p5)
}
0x11e8   : > { %s4606_s0 = smov 64   ;;  %s4607_s1 = smov 4   ;;  %v3815_v35 = vld [vmem:[%s5651_s21 + $0x2] ss:$0 sm:$0xff] }
0x11e9   : > { %4074 = dma.vmem_to_hbm [thread:$0]  (%p5659_p0), %s5482_s6, 256, %s5480_s12, %s3514_s16, %s4606_s0, %s4606_s0, %s4607_s1  }
0x11ea   : > { %s3751_s4 = sshll.u32 %s4979_s17, 3  ;;  %v3816_v37 = vld [vmem:[%s5653_s23 + $0x2] ss:$0 sm:$0xff]  ;;  %s3819_s16 = sshll.u32 %s5657_s28, 7 }
0x11eb   : > { %s688_s9 = scalar_lea.vmem [#allocation18], %s3751_s4  ;;  %s5660_s1 = sld [smem:[#allocation45_spill]] }
0x11ec   : > { %s3528_s14 = sshll.u32 %s688_s9, 4  ;;  %s3509_s10 = scalar_lea.sflag [#allocation8], %s4979_s17  ;;  %s5521_s14 = int_to_ptr.vmem [resolvable:$true] %s3528_s14 }
0x11ed   : > { %s4479_s27 = scalar_lea.vmem %s5521_s14, 128  ;;  %s4608_s28 = smov [#allocation18]  }
0x11ee   : > { %p4480_p2 = scmp.ne.s32.totalorder %s5521_s14, %s4479_s27  ;;  %s4483_s4 = sshll.u32 %s4608_s28, 4  ;;  %s4484_s4 = int_to_ptr.vmem [resolvable:$false] %s4483_s4 }
0x11ef   : > { %s4485_s6 = scalar_lea.vmem %s4484_s4, 256  ;;  %p4486_p6 = scmp.lt.s32.totalorder %s5521_s14, %s4484_s4 }
0x11f0   : > { %p4481_p4 = pnand %p4480_p2, %p5659_p0  ;;  %p4487_p10 = scmp.lt.s32.totalorder %s4485_s6, %s4479_s27 }
0x11f1   : > { %s5519_s2 = scalar_lea.hbm %s5660_s1, %s3819_s16 }
0x11f2   : > { %p4482_p11 = pneg %p4481_p4  ;;  %p4488_p1 = por %p4487_p10, %p4486_p6 }
0x11f4   : > { %p4489_p9 = pnand %p4488_p1, %p4482_p11 }
0x1268   : > { %v3484_v30 = vpop.xlane.xlu0 %3483 }
0x1269   : > { %v3485_v10 = vmul.f32 0.032258064, %v3484_v30 }
0x126b   : > { %4247 = vrsqrt.f32 %v3485_v10  ;;  %vm3488_vm13 = vcmp.eq.f32.partialorder %v3485_v10, inf  ;;  %v3491_v31 = vand.u32 2147483648, %v3485_v10  ;;  %vm3490_vm14 = vcmp.eq.f32.partialorder %v3485_v10, 0.0 }
0x1275   : > { %v4248_v43 = vpop.eup %4247 }
0x1276   : > { %v3487_v47 = vmul.f32 %v4248_v43, %v3485_v10 }
0x1278   : > { %v3489_v32 = vsel %vm3488_vm13, %v3485_v10, %v3487_v47 }
0x1279   : > { %v3492_v20 = vsel %vm3490_vm14, %v3491_v31, %v3489_v32 }
0x127a   : > { %v3493_v33 = vadd.f32 1e-12, %v3492_v20 }
0x127c   : > { %4249 = vrcp.f32 %v3493_v33 }
0x1286   : > { %v4250_v34 = vpop.eup %4249 }
0x1287   : > { %v3496_v36 = vmul.f32 %v4250_v34, %v3480_v27 }
0x1289   : > { %v3501_v38 = vmul.f32 %v3815_v35, %v3496_v36 }
0x128b   : > { %v3506_v39 = vadd.f32 %v3816_v37, %v3501_v38 }
0x128d   : > { %3507 = vst.msk [vmem:[%s688_s9] sm:$0xff] %vm727_vm1, %v3506_v39 }
0x128e   : > { %4492 = shalt.err (!%p4489_p9)
}
0x128f   : > { %s4493_s17 = scalar_lea.hbm %s5519_s2, 128  ;;  %s4497_s9 = scalar_lea.hbm %s5660_s1, 256 }
0x1290   : > { %p4494_p8 = scmp.ne.s32.totalorder %s5519_s2, %s4493_s17  ;;  %p4498_p13 = scmp.lt.u32.totalorder %s5519_s2, %s5660_s1 }
0x1291   : > { %p4499_p7 = scmp.lt.u32.totalorder %s4497_s9, %s4493_s17  ;;  %p4501_p2 = scmp.lt.u32.totalorder %s4493_s17, %s5519_s2 }
0x1292   : > { %p4495_p3 = pnand %p4494_p8, %p5659_p0 }
0x1293   : > { %p4500_p5 = por %p4499_p7, %p4498_p13 }
0x1294   : > { %p4496_p12 = pneg %p4495_p3 }
0x1295   : > { %p4502_p4 = por %p4501_p2, %p4500_p5 }
0x1297   : > { %p4503_p11 = pnand %p4502_p4, %p4496_p12 }
0x1299   : > { %4506 = shalt.err (!%p4503_p11)
}
0x129a   : > { %4073 = dma.vmem_to_hbm [thread:$0]  (%p5659_p0), %s5521_s14, 128, %s5519_s2, %s3509_s10  }
0x129b PF: > { %s3557_s27 = sand.u32 1, %s4561_s24   ;;  %p5661_p6 = scmp.ne.s32.totalorder %s5636_s13, 0 }
0x129c   : > { %p5662_p10 = scmp.ge.s32.totalorder %s4581_s29, 2  ;;  %s3558_s28 = scalar_lea.sflag [#allocation8], %s3557_s27 }
0x129e   : > { %p4101_p1 = pnand %p5662_p10, %p5661_p6 }
0x12a0   : > { %4552 = dma.done.wait (!%p4101_p1), %s3558_s28, 128  }
0x12a1   : > { %4554 = vsyncadd (!%p4101_p1), %s3558_s28, 4294967168  ;;  %s3567_s4 = scalar_lea.sflag [#allocation20], %s3557_s27 }
0x12a2   : > { %4556 = dma.done.wait (!%p4101_p1), %s3567_s4, 256  }
0x12a3   : > { %4558 = vsyncadd (!%p4101_p1), %s3567_s4, 4294967040  ;;  %s42_s29 = sadd.s32 1, %s4581_s29   ;;  %s5663_s27 = sld [smem:[#allocation29_spill]] }
0x12a4   : > { %p39_p9 = scmp.ge.s32.totalorder %s42_s29, 4   ;;  %s5664_s28 = sld [smem:[#allocation30_spill]] }
0x12a5   : > { %s5665_s24 = smov %s4565_s25  ;;  %s5666_s25 = smov %s4569_s26 }
0x12a6   : > { %s5667_s26 = smov %s4899_s22  ;;  %41 = sbr.rel (!%p39_p9) target bundleno = 29 (0x1d), region = 184 }
0x12ad   :  { %3572 = vsyncpa [#allocation7], 1 }
0x12ae   :  { %3574 = vsyncpa [#allocation7 + $0x1], 1 }
0x12af   :  { %3575 = vsyncpa [#allocation10], 1 }
0x12b0   :  { %3577 = vsyncpa [#allocation10 + $0x1], 1 }
0x12b1   :  { %3578 = vsyncpa [#allocation13], 1 }
0x12b2   :  { %3579 = vsyncpa [#allocation16], 1 }
0x12b3   :  { %3580 = vsyncpa [#allocation8], 1 }
0x12b4   :  { %3582 = vsyncpa [#allocation8 + $0x1], 1 }
0x12b5   :  { %3583 = vsyncpa [#allocation20], 1 }
0x12b6   :  { %3585 = vsyncpa [#allocation20 + $0x1], 1 }

</bundles_post_ra>
